<compile_context>
chip_gen: v7x
topology: tpu7x:2x2x1
jax: 0.10.0
libtpu: 0.0.40
codegen_flags: <defaults>
</compile_context>

<pallas_src>
import functools

import jax
import jax.numpy as jnp
from jax.experimental import pallas as pl
from jax.experimental.pallas import tpu as pltpu


IDIM = 39
ODIM = 1
HIDDEN = 512
ROW_CAP = 512        # max MLP rows (batch*time) per grid step (VMEM friendly)
BATCH_FUSE_CAP = 32  # max batch elements fused into one grid step


def _pick_tiles(B, T):
    """Return (bB, tT): batch-group size and time-tile size per grid step.

    Guarantees either bB == 1 (time axis tiled, per-batch accumulation) or
    tT == T (whole time axis resident; several batch elements fused so the MXU
    sees enough rows even for short sequences). Block rows bB*tT are always a
    multiple of 8 or equal to the full flattened extent B*T.
    """
    tT = 0
    for step in (16, 8):                       # prefer bf16-native 16-row tiles
        for cand in range(step, min(ROW_CAP, T) + 1, step):
            if T % cand == 0:
                tT = max(tT, cand)
        if tT:
            break
    if tT == 0:
        # TODO(synk): sequences with no 8-aligned divisor fall back to a single
        # full-array step (could mask-pad the time axis instead for huge B*T).
        return B, T
    if tT < T:
        return 1, tT                           # long sequences: tile time only
    bB = 1
    for cand in range(1, min(B, BATCH_FUSE_CAP) + 1):
        if B % cand == 0 and cand * T <= ROW_CAP:
            bB = cand
    return bB, T


def _mlp_pool_kernel(x_ref, w1_ref, b1_ref, w2_ref, b2_ref, w3_ref, b3_ref,
                     w4_ref, b4_ref, o_ref, acc_ref, *, bB, tT, inv_t):
    t = pl.program_id(1)

    @pl.when(t == 0)
    def _init():
        acc_ref[...] = jnp.zeros_like(acc_ref)

    # x_ref: (bB * tT, IDIM) bf16 rows (flattened batch*time).
    h = jnp.dot(x_ref[...], w1_ref[...], preferred_element_type=jnp.float32)
    h = jnp.maximum(h + b1_ref[...], 0.0)
    h = jnp.dot(h.astype(jnp.bfloat16), w2_ref[...],
                preferred_element_type=jnp.float32)
    h = jnp.maximum(h + b2_ref[...], 0.0)
    h = jnp.dot(h.astype(jnp.bfloat16), w3_ref[...],
                preferred_element_type=jnp.float32)
    h = jnp.maximum(h + b3_ref[...], 0.0)

    # Per-batch partial time-sums (XLU sublane reduce); mean applied at the end.
    if bB == 1:
        acc_ref[...] += jnp.sum(h, axis=0, keepdims=True)
    else:
        for bi in range(bB):                 # static unrolled, aligned slices
            seg = h[bi * tT:(bi + 1) * tT, :]
            acc_ref[pl.ds(bi, 1), :] += jnp.sum(seg, axis=0, keepdims=True)

    @pl.when(t == pl.num_programs(1) - 1)
    def _finalize():
        pooled = acc_ref[...] * inv_t                                # (bB, H) f32
        logits = jnp.dot(pooled, w4_ref[...],
                         preferred_element_type=jnp.float32) + b4_ref[...]
        o_ref[:, 0, :] = jax.nn.sigmoid(logits)                      # (bB, ODIM)


@jax.jit
def classification_forward(audio_feat, params):
    """audio_feat: (B, T, IDIM) float32 -> (B, ODIM) float32 posteriors."""
    B, T, idim = audio_feat.shape
    assert idim == IDIM, idim
    bB, tT = _pick_tiles(B, T)
    num_t = T // tT
    rows = bB * tT
    inv_t = 1.0 / float(T)                   # static, folded into the finalize

    # bf16 operands for the bandwidth/MXU-dominant parts; everything else f32.
    x = audio_feat.reshape(B * T, IDIM).astype(jnp.bfloat16)
    w1 = params["w1"].astype(jnp.bfloat16)   # (IDIM, H)
    w2 = params["w2"].astype(jnp.bfloat16)   # (H, H)
    w3 = params["w3"].astype(jnp.bfloat16)   # (H, H)
    w4 = params["w4"]                        # (H, ODIM) f32 (tiny)
    b1 = params["b1"].reshape(1, HIDDEN)
    b2 = params["b2"].reshape(1, HIDDEN)
    b3 = params["b3"].reshape(1, HIDDEN)
    b4 = params["b4"].reshape(1, ODIM)

    const = lambda b, t: (0, 0)
    out = pl.pallas_call(
        functools.partial(_mlp_pool_kernel, bB=bB, tT=tT, inv_t=inv_t),
        out_shape=jax.ShapeDtypeStruct((B, 1, ODIM), jnp.float32),
        grid=(B // bB, num_t),
        in_specs=[
            pl.BlockSpec((rows, IDIM), lambda b, t: (b * num_t + t, 0)),  # x rows
            pl.BlockSpec((IDIM, HIDDEN), const),                          # w1 (resident)
            pl.BlockSpec((1, HIDDEN), const),                             # b1
            pl.BlockSpec((HIDDEN, HIDDEN), const),                        # w2
            pl.BlockSpec((1, HIDDEN), const),                             # b2
            pl.BlockSpec((HIDDEN, HIDDEN), const),                        # w3
            pl.BlockSpec((1, HIDDEN), const),                             # b3
            pl.BlockSpec((HIDDEN, ODIM), const),                          # w4
            pl.BlockSpec((1, ODIM), const),                               # b4
        ],
        out_specs=pl.BlockSpec((bB, 1, ODIM), lambda b, t: (b, 0, 0)),
        scratch_shapes=[pltpu.VMEM((bB, HIDDEN), jnp.float32)],           # pooled acc
        compiler_params=pltpu.CompilerParams(
            dimension_semantics=("parallel", "arbitrary")),
    )(x, w1, b1, w2, b2, w3, b3, w4, b4)

    return out.reshape(B, ODIM)


def init_params(key):
    """PyTorch-Linear-style init: U(-1/sqrt(fan_in), 1/sqrt(fan_in)).
    Weights stored as (fan_in, fan_out) so the kernel computes x @ W."""
    def linear(k, fan_in, fan_out):
        kw, kb = jax.random.split(k)
        bound = 1.0 / jnp.sqrt(jnp.float32(fan_in))
        w = jax.random.uniform(kw, (fan_in, fan_out), jnp.float32, -bound, bound)
        b = jax.random.uniform(kb, (fan_out,), jnp.float32, -bound, bound)
        return w, b

    k1, k2, k3, k4 = jax.random.split(key, 4)
    w1, b1 = linear(k1, IDIM, HIDDEN)
    w2, b2 = linear(k2, HIDDEN, HIDDEN)
    w3, b3 = linear(k3, HIDDEN, HIDDEN)
    w4, b4 = linear(k4, HIDDEN, ODIM)
    return dict(w1=w1, b1=b1, w2=w2, b2=b2, w3=w3, b3=b3, w4=w4, b4=b4)


def _reference(audio_feat, p):
    h = jnp.maximum(audio_feat @ p["w1"] + p["b1"], 0.0)
    h = jnp.maximum(h @ p["w2"] + p["b2"], 0.0)
    h = jnp.maximum(h @ p["w3"] + p["b3"], 0.0)
    h = jnp.mean(h, axis=1)
    return jax.nn.sigmoid(h @ p["w4"] + p["b4"])


if __name__ == "__main__":
    key = jax.random.PRNGKey(0)
    k_params, k_x1, k_x2 = jax.random.split(key, 3)

    params = init_params(k_params)

    # Small shape from the spec: batch=2, seq=8, idim=39 (batch-fused path).
    B, T = 2, 8
    audio_feat = jax.random.normal(k_x1, (B, T, IDIM), jnp.float32)
    out = jax.block_until_ready(classification_forward(audio_feat, params))
    ref = _reference(audio_feat, params)
    assert out.shape == (B, ODIM), out.shape
    # bf16 matmul operands (f32 accumulation) -> compare to f32 reference loosely.
    assert jnp.allclose(out, ref, atol=2e-2, rtol=2e-2), (out, ref)

    # Longer sequence exercises the tiled-time accumulation path (grid t-axis).
    B2, T2 = 2, 1024
    audio_feat2 = jax.random.normal(k_x2, (B2, T2, IDIM), jnp.float32)
    out2 = jax.block_until_ready(classification_forward(audio_feat2, params))
    ref2 = _reference(audio_feat2, params)
    assert out2.shape == (B2, ODIM), out2.shape
    assert jnp.allclose(out2, ref2, atol=2e-2, rtol=2e-2), (out2, ref2)

    print("KERNEL_OK")
</pallas_src>

<mosaic_0001>
module attributes {stable_mosaic.version = 11 : i64} {
  func.func @_mlp_pool_kernel(%arg0: i32, %arg1: i32, %arg2: memref<16x39xbf16, #tpu.memory_space<vmem>>, %arg3: memref<39x512xbf16, #tpu.memory_space<vmem>>, %arg4: memref<1x512xf32, #tpu.memory_space<vmem>>, %arg5: memref<512x512xbf16, #tpu.memory_space<vmem>>, %arg6: memref<1x512xf32, #tpu.memory_space<vmem>>, %arg7: memref<512x512xbf16, #tpu.memory_space<vmem>>, %arg8: memref<1x512xf32, #tpu.memory_space<vmem>>, %arg9: memref<512x1xf32, #tpu.memory_space<vmem>>, %arg10: memref<1x1xf32, #tpu.memory_space<vmem>>, %arg11: memref<2x1x1xf32, #tpu.memory_space<vmem>>, %arg12: memref<2x512xf32, #tpu.memory_space<vmem>>) attributes {dimension_semantics = [#tpu.dimension_semantics<parallel>, #tpu.dimension_semantics<arbitrary>], iteration_bounds = array<i64: 1, 1>, scalar_prefetch = 0 : i64, scratch_operands = 1 : i64, tpu.core_type = #tpu.core_type<tc>, window_params = [{transform_indices = @transform_0, window_bounds = array<i64: 16, 39>}, {pipeline_mode = #tpu.pipeline_mode<synchronous>, transform_indices = @transform_1, window_bounds = array<i64: 39, 512>}, {pipeline_mode = #tpu.pipeline_mode<synchronous>, transform_indices = @transform_2, window_bounds = array<i64: 1, 512>}, {pipeline_mode = #tpu.pipeline_mode<synchronous>, transform_indices = @transform_3, window_bounds = array<i64: 512, 512>}, {pipeline_mode = #tpu.pipeline_mode<synchronous>, transform_indices = @transform_4, window_bounds = array<i64: 1, 512>}, {pipeline_mode = #tpu.pipeline_mode<synchronous>, transform_indices = @transform_5, window_bounds = array<i64: 512, 512>}, {pipeline_mode = #tpu.pipeline_mode<synchronous>, transform_indices = @transform_6, window_bounds = array<i64: 1, 512>}, {pipeline_mode = #tpu.pipeline_mode<synchronous>, transform_indices = @transform_7, window_bounds = array<i64: 512, 1>}, {pipeline_mode = #tpu.pipeline_mode<synchronous>, transform_indices = @transform_8, window_bounds = array<i64: 1, 1>}, {transform_indices = @transform_9, window_bounds = array<i64: 2, 1, 1>}]} {
    %c0_i32 = arith.constant 0 : i32
    %0 = arith.cmpi eq, %arg1, %c0_i32 : i32
    %1 = arith.extui %0 : i1 to i32
    %c0_i32_0 = arith.constant 0 : i32
    %2 = arith.cmpi ne, %1, %c0_i32_0 : i32
    scf.if %2 {
      %cst_30 = arith.constant 0.000000e+00 : f32
      %42 = vector.broadcast %cst_30 : f32 to vector<2x512xf32>
      %c0_31 = arith.constant 0 : index
      %c0_32 = arith.constant 0 : index
      %43 = vector.load %arg12[%c0_31, %c0_32] : memref<2x512xf32, #tpu.memory_space<vmem>>, vector<2x512xf32>
      tpu.vector_store %arg12[%c0_31, %c0_32], %42 {strides = array<i32>} : memref<2x512xf32, #tpu.memory_space<vmem>>, vector<2x512xf32>,
    } else {
    }
    %c0 = arith.constant 0 : index
    %c0_1 = arith.constant 0 : index
    %3 = vector.load %arg2[%c0, %c0_1] : memref<16x39xbf16, #tpu.memory_space<vmem>>, vector<16x39xbf16>
    %c0_2 = arith.constant 0 : index
    %c0_3 = arith.constant 0 : index
    %4 = vector.load %arg3[%c0_2, %c0_3] : memref<39x512xbf16, #tpu.memory_space<vmem>>, vector<39x512xbf16>
    %cst = arith.constant dense<0.000000e+00> : vector<16x512xf32>
    %5 = tpu.matmul %3, %4, %cst {dimension_numbers = #tpu.dot_dimension_numbers<[1], [0], [0], [1], [0, 0, 1, 1], [], []>} : vector<16x39xbf16>, vector<39x512xbf16>, vector<16x512xf32> -> vector<16x512xf32>
    %c0_4 = arith.constant 0 : index
    %c0_5 = arith.constant 0 : index
    %6 = vector.load %arg4[%c0_4, %c0_5] : memref<1x512xf32, #tpu.memory_space<vmem>>, vector<1x512xf32>
    %7 = vector.broadcast %6 : vector<1x512xf32> to vector<16x512xf32>
    %8 = arith.addf %5, %7 : vector<16x512xf32>
    %cst_6 = arith.constant 0.000000e+00 : f32
    %9 = vector.broadcast %cst_6 : f32 to vector<16x512xf32>
    %10 = arith.maximumf %8, %9 : vector<16x512xf32>
    %11 = arith.truncf %10 : vector<16x512xf32> to vector<16x512xbf16>
    %c0_7 = arith.constant 0 : index
    %c0_8 = arith.constant 0 : index
    %12 = vector.load %arg5[%c0_7, %c0_8] : memref<512x512xbf16, #tpu.memory_space<vmem>>, vector<512x512xbf16>
    %cst_9 = arith.constant dense<0.000000e+00> : vector<16x512xf32>
    %13 = tpu.matmul %11, %12, %cst_9 {dimension_numbers = #tpu.dot_dimension_numbers<[1], [0], [0], [1], [0, 0, 1, 1], [], []>} : vector<16x512xbf16>, vector<512x512xbf16>, vector<16x512xf32> -> vector<16x512xf32>
    %c0_10 = arith.constant 0 : index
    %c0_11 = arith.constant 0 : index
    %14 = vector.load %arg6[%c0_10, %c0_11] : memref<1x512xf32, #tpu.memory_space<vmem>>, vector<1x512xf32>
    %15 = vector.broadcast %14 : vector<1x512xf32> to vector<16x512xf32>
    %16 = arith.addf %13, %15 : vector<16x512xf32>
    %cst_12 = arith.constant 0.000000e+00 : f32
    %17 = vector.broadcast %cst_12 : f32 to vector<16x512xf32>
    %18 = arith.maximumf %16, %17 : vector<16x512xf32>
    %19 = arith.truncf %18 : vector<16x512xf32> to vector<16x512xbf16>
    %c0_13 = arith.constant 0 : index
    %c0_14 = arith.constant 0 : index
    %20 = vector.load %arg7[%c0_13, %c0_14] : memref<512x512xbf16, #tpu.memory_space<vmem>>, vector<512x512xbf16>
    %cst_15 = arith.constant dense<0.000000e+00> : vector<16x512xf32>
    %21 = tpu.matmul %19, %20, %cst_15 {dimension_numbers = #tpu.dot_dimension_numbers<[1], [0], [0], [1], [0, 0, 1, 1], [], []>} : vector<16x512xbf16>, vector<512x512xbf16>, vector<16x512xf32> -> vector<16x512xf32>
    %c0_16 = arith.constant 0 : index
    %c0_17 = arith.constant 0 : index
    %22 = vector.load %arg8[%c0_16, %c0_17] : memref<1x512xf32, #tpu.memory_space<vmem>>, vector<1x512xf32>
    %23 = vector.broadcast %22 : vector<1x512xf32> to vector<16x512xf32>
    %24 = arith.addf %21, %23 : vector<16x512xf32>
    %cst_18 = arith.constant 0.000000e+00 : f32
    %25 = vector.broadcast %cst_18 : f32 to vector<16x512xf32>
    %26 = arith.maximumf %24, %25 : vector<16x512xf32>
    %27 = vector.extract_strided_slice %26 {offsets = [0, 0], sizes = [8, 512], strides = [1, 1]} : vector<16x512xf32> to vector<8x512xf32>
    %c0_19 = arith.constant 0 : index
    %c0_20 = arith.constant 0 : index
    %28 = vector.load %arg12[%c0_19, %c0_20] : memref<2x512xf32, #tpu.memory_space<vmem>>, vector<1x512xf32>
    %cst_21 = arith.constant dense<0.000000e+00> : vector<512xf32>
    %29 = vector.multi_reduction <add>, %27, %cst_21 [0] : vector<8x512xf32> to vector<512xf32>
    %30 = vector.shape_cast %29 : vector<512xf32> to vector<1x512xf32>
    %31 = arith.addf %28, %30 : vector<1x512xf32>
    %c0_22 = arith.constant 0 : index
    %c0_23 = arith.constant 0 : index
    %32 = vector.load %arg12[%c0_22, %c0_23] : memref<2x512xf32, #tpu.memory_space<vmem>>, vector<1x512xf32>
    tpu.vector_store %arg12[%c0_22, %c0_23], %31 {strides = array<i32>} : memref<2x512xf32, #tpu.memory_space<vmem>>, vector<1x512xf32>,
    %33 = vector.extract_strided_slice %26 {offsets = [8, 0], sizes = [8, 512], strides = [1, 1]} : vector<16x512xf32> to vector<8x512xf32>
    %c1 = arith.constant 1 : index
    %c0_24 = arith.constant 0 : index
    %34 = vector.load %arg12[%c1, %c0_24] : memref<2x512xf32, #tpu.memory_space<vmem>>, vector<1x512xf32>
    %cst_25 = arith.constant dense<0.000000e+00> : vector<512xf32>
    %35 = vector.multi_reduction <add>, %33, %cst_25 [0] : vector<8x512xf32> to vector<512xf32>
    %36 = vector.shape_cast %35 : vector<512xf32> to vector<1x512xf32>
    %37 = arith.addf %34, %36 : vector<1x512xf32>
    %c1_26 = arith.constant 1 : index
    %c0_27 = arith.constant 0 : index
    %38 = vector.load %arg12[%c1_26, %c0_27] : memref<2x512xf32, #tpu.memory_space<vmem>>, vector<1x512xf32>
    tpu.vector_store %arg12[%c1_26, %c0_27], %37 {strides = array<i32>} : memref<2x512xf32, #tpu.memory_space<vmem>>, vector<1x512xf32>,
    %c0_i32_28 = arith.constant 0 : i32
    %39 = arith.cmpi eq, %arg1, %c0_i32_28 : i32
    %40 = arith.extui %39 : i1 to i32
    %c0_i32_29 = arith.constant 0 : i32
    %41 = arith.cmpi ne, %40, %c0_i32_29 : i32
    scf.if %41 {
      %c0_30 = arith.constant 0 : index
      %c0_31 = arith.constant 0 : index
      %42 = vector.load %arg12[%c0_30, %c0_31] : memref<2x512xf32, #tpu.memory_space<vmem>>, vector<2x512xf32>
      %cst_32 = arith.constant 1.250000e-01 : f32
      %43 = vector.broadcast %cst_32 : f32 to vector<2x512xf32>
      %44 = arith.mulf %42, %43 : vector<2x512xf32>
      %c0_33 = arith.constant 0 : index
      %c0_34 = arith.constant 0 : index
      %45 = vector.load %arg9[%c0_33, %c0_34] : memref<512x1xf32, #tpu.memory_space<vmem>>, vector<512x1xf32>
      %cst_35 = arith.constant dense<0.000000e+00> : vector<2x1xf32>
      %46 = tpu.matmul %44, %45, %cst_35 {dimension_numbers = #tpu.dot_dimension_numbers<[1], [0], [0], [1], [0, 0, 1, 1], [], []>} : vector<2x512xf32>, vector<512x1xf32>, vector<2x1xf32> -> vector<2x1xf32>
      %c0_36 = arith.constant 0 : index
      %c0_37 = arith.constant 0 : index
      %47 = vector.load %arg10[%c0_36, %c0_37] : memref<1x1xf32, #tpu.memory_space<vmem>>, vector<1x1xf32>
      %48 = vector.broadcast %47 : vector<1x1xf32> to vector<2x1xf32>
      %49 = arith.addf %46, %48 : vector<2x1xf32>
      %50 = arith.negf %49 : vector<2x1xf32>
      %51 = math.exp %50 : vector<2x1xf32>
      %cst_38 = arith.constant 1.000000e+00 : f32
      %52 = vector.broadcast %cst_38 : f32 to vector<2x1xf32>
      %53 = arith.addf %52, %51 : vector<2x1xf32>
      %54 = arith.divf %52, %53 : vector<2x1xf32>
      %c0_39 = arith.constant 0 : index
      %c0_40 = arith.constant 0 : index
      %c0_41 = arith.constant 0 : index
      %55 = vector.load %arg11[%c0_39, %c0_40, %c0_41] : memref<2x1x1xf32, #tpu.memory_space<vmem>>, vector<2x1x1xf32>
      %56 = vector.shape_cast %55 : vector<2x1x1xf32> to vector<2x1xf32>
      %57 = vector.shape_cast %54 : vector<2x1xf32> to vector<2x1x1xf32>
      tpu.vector_store %arg11[%c0_39, %c0_40, %c0_41], %57 {strides = array<i32>} : memref<2x1x1xf32, #tpu.memory_space<vmem>>, vector<2x1x1xf32>,
    } else {
    }
    return
  }
  func.func @transform_0(%arg0: i32, %arg1: i32) -> (i32, i32) {
    %c1_i32 = arith.constant 1 : i32
    %0 = arith.muli %arg0, %c1_i32 : i32
    %1 = arith.addi %0, %arg1 : i32
    %c0_i32 = arith.constant 0 : i32
    %c0_i32_0 = arith.constant 0 : i32
    return %1, %c0_i32 : i32, i32
  }
  func.func @transform_1(%arg0: i32, %arg1: i32) -> (i32, i32) {
    %c0_i32 = arith.constant 0 : i32
    %c0_i32_0 = arith.constant 0 : i32
    %c0_i32_1 = arith.constant 0 : i32
    return %c0_i32, %c0_i32_0 : i32, i32
  }
  func.func @transform_2(%arg0: i32, %arg1: i32) -> (i32, i32) {
    %c0_i32 = arith.constant 0 : i32
    %c0_i32_0 = arith.constant 0 : i32
    %c0_i32_1 = arith.constant 0 : i32
    return %c0_i32, %c0_i32_0 : i32, i32
  }
  func.func @transform_3(%arg0: i32, %arg1: i32) -> (i32, i32) {
    %c0_i32 = arith.constant 0 : i32
    %c0_i32_0 = arith.constant 0 : i32
    %c0_i32_1 = arith.constant 0 : i32
    return %c0_i32, %c0_i32_0 : i32, i32
  }
  func.func @transform_4(%arg0: i32, %arg1: i32) -> (i32, i32) {
    %c0_i32 = arith.constant 0 : i32
    %c0_i32_0 = arith.constant 0 : i32
    %c0_i32_1 = arith.constant 0 : i32
    return %c0_i32, %c0_i32_0 : i32, i32
  }
  func.func @transform_5(%arg0: i32, %arg1: i32) -> (i32, i32) {
    %c0_i32 = arith.constant 0 : i32
    %c0_i32_0 = arith.constant 0 : i32
    %c0_i32_1 = arith.constant 0 : i32
    return %c0_i32, %c0_i32_0 : i32, i32
  }
  func.func @transform_6(%arg0: i32, %arg1: i32) -> (i32, i32) {
    %c0_i32 = arith.constant 0 : i32
    %c0_i32_0 = arith.constant 0 : i32
    %c0_i32_1 = arith.constant 0 : i32
    return %c0_i32, %c0_i32_0 : i32, i32
  }
  func.func @transform_7(%arg0: i32, %arg1: i32) -> (i32, i32) {
    %c0_i32 = arith.constant 0 : i32
    %c0_i32_0 = arith.constant 0 : i32
    %c0_i32_1 = arith.constant 0 : i32
    return %c0_i32, %c0_i32_0 : i32, i32
  }
  func.func @transform_8(%arg0: i32, %arg1: i32) -> (i32, i32) {
    %c0_i32 = arith.constant 0 : i32
    %c0_i32_0 = arith.constant 0 : i32
    %c0_i32_1 = arith.constant 0 : i32
    return %c0_i32, %c0_i32_0 : i32, i32
  }
  func.func @transform_9(%arg0: i32, %arg1: i32) -> (i32, i32, i32) {
    %c0_i32 = arith.constant 0 : i32
    %c0_i32_0 = arith.constant 0 : i32
    %c0_i32_1 = arith.constant 0 : i32
    return %arg0, %c0_i32, %c0_i32_0 : i32, i32, i32
  }
}

</mosaic_0001>

<bundles_post_ra>
// kernel: classification_forward.1
= control target key start
LH: loop header
LB: loop body
LE: loop exit
PB: predicated region body
PF: predicated region fallthrough
CT: control target
= control target key end

     0   :  { %vm155_vm0 = vcmask 1042432   ;;  %vm156_vm1 = vcmask 1043456   ;;  %v3461_v1 = vmov 65535   ;;  %v3462_v3 = vmov 0   ;;  %s4578_s1 = inlined_call_operand.vmem [shape: bf16[39,512], index: 1, kind: input, shape index: {}]   ;;  %s4579_s0 = inlined_call_operand.vmem [shape: bf16[16,39], index: 0, kind: input, shape index: {}]   ;;  %s4580_s3 = inlined_call_operand.vmem [shape: bf16[512,512], index: 3, kind: input, shape index: {}]   ;;  %s4581_s5 = inlined_call_operand.vmem [shape: bf16[512,512], index: 5, kind: input, shape index: {}]   ;;  %s4582_s2 = inlined_call_operand.vmem [shape: f32[1,512], index: 2, kind: input, shape index: {}]   ;;  %s4583_s4 = inlined_call_operand.vmem [shape: f32[1,512], index: 4, kind: input, shape index: {}]   ;;  %s4584_s7 = inlined_call_operand.vmem [shape: f32[512,1], index: 7, kind: input, shape index: {}]   ;;  %s4585_s6 = inlined_call_operand.vmem [shape: f32[1,512], index: 6, kind: input, shape index: {}]   ;;  %s4586_s8 = inlined_call_operand.<no memory space> [shape: f32[1,1], index: 8, kind: input, shape index: {}]   ;;  %s4587_s9 = inlined_call_operand.vmem [shape: f32[2,1,1], index: 9, kind: output, shape index: {}]  }
   0x1   :  { %v3056_v0 = vld [vmem:[%s4578_s1 + $0x4] ss:$16 sps:$4 sm:$0xff]   ;;  %v157_v2 = vsel %vm155_vm0, 4294967295, %v3461_v1  ;;  %203 = vmatprep.mubr.bf16.mxu0 %v3462_v3  ;;  %246 = vmatprep.mubr.bf16.mxu1 %v3462_v3  ;;  %v3058_v4 = vld [vmem:[%s4578_s1] ss:$16 sps:$4 sm:$0xff]   ;;  %v73_v15 = vld [vmem:[%s4578_s1 + $0x48] sm:$0xff] }
   0x2   :  { %171 = vmatprep.subr.bf16.mxu0 %v3056_v0  ;;  %v3059_v5 = vld [vmem:[%s4578_s1 + $0x24] ss:$16 sps:$4 sm:$0xff]   ;;  %v158_v7 = vsel %vm156_vm1, %v157_v2, 0  ;;  %v3061_v8 = vld [vmem:[%s4578_s1 + $0x20] ss:$16 sps:$4 sm:$0xff]   ;;  %v2624_v18 = vcombine.high %v73_v15, %v73_v15  ;;  %v2623_v19 = vcombine.low %v73_v15, %v73_v15  ;;  %vm151_vm2 = vcmask 318464  }
   0x3   :  { %v72_v6 = vld [vmem:[%s4578_s1 + $0x40] sm:$0xff]  ;;  %172 = vmatpush1.bf16.msra.mxu0 %v3058_v4  ;;  %v3065_v11 = vld [vmem:[%s4578_s1 + $0xc] ss:$16 sps:$4 sm:$0xff]   ;;  %v3067_v13 = vld [vmem:[%s4578_s1 + $0x8] ss:$16 sps:$4 sm:$0xff]   ;;  %vm2599_vm4 = vcmask 0  }
   0x4   :  { %v2622_v9 = vcombine.high %v72_v6, %v72_v6  ;;  %v2621_v10 = vcombine.low %v72_v6, %v72_v6  ;;  %173 = vmatprep.subr.bf16.mxu0 %v3059_v5  ;;  %214 = vmatprep.subr.bf16.mxu1 %v3065_v11  ;;  %v3068_v14 = vld [vmem:[%s4578_s1 + $0x2c] ss:$16 sps:$4 sm:$0xff]   ;;  %v3070_v17 = vld [vmem:[%s4578_s1 + $0x28] ss:$16 sps:$4 sm:$0xff]   ;;  %v3075_v20 = vld [vmem:[%s4580_s3 + $0x4] ss:$16 sps:$4 sm:$0xff]   ;;  %v169_v21 = vand.u32 %v2624_v18, %v158_v7 }
   0x5   :  { %215 = vmatpush1.bf16.msra.mxu1 %v3067_v13  ;;  %v3064_v22 = vld [vmem:[%s4579_s0] sm:$0xff]   ;;  %v166_v24 = vand.u32 %v2623_v19, %v158_v7  ;;  %v3078_v25 = vld [vmem:[%s4580_s3 + $0xc] ss:$16 sps:$4 sm:$0xff]   ;;  %v3076_v27 = vld [vmem:[%s4580_s3 + $0x8] ss:$16 sps:$4 sm:$0xff]  }
   0x6   :  { %v163_v12 = vand.u32 %v2622_v9, %v158_v7  ;;  %v160_v16 = vand.u32 %v2621_v10, %v158_v7  ;;  %216 = vmatprep.subr.bf16.mxu1 %v3068_v14  ;;  %v3073_v23 = vld [vmem:[%s4580_s3] ss:$16 sps:$4 sm:$0xff]   ;;  %v3081_v26 = vld [vmem:[%s4580_s3 + $0x24] ss:$16 sps:$4 sm:$0xff]   ;;  %v3084_v29 = vld [vmem:[%s4580_s3 + $0x2c] ss:$16 sps:$4 sm:$0xff]  }
   0x7   :  { %174 = vmatpush1.bf16.msra.mxu0 %v3061_v8  ;;  %v3079_v28 = vld [vmem:[%s4580_s3 + $0x20] ss:$16 sps:$4 sm:$0xff]   ;;  %v3087_v30 = vld [vmem:[%s4580_s3 + $0x44] ss:$16 sps:$4 sm:$0xff]   ;;  %v3082_v31 = vld [vmem:[%s4580_s3 + $0x28] ss:$16 sps:$4 sm:$0xff]  }
   0x8   :  { %175 = vmatprep.subr.bf16.mxu0 %v163_v12  ;;  %v3085_v32 = vld [vmem:[%s4580_s3 + $0x40] ss:$16 sps:$4 sm:$0xff]   ;;  %v3090_v33 = vld [vmem:[%s4580_s3 + $0x4c] ss:$16 sps:$4 sm:$0xff]   ;;  %v3093_v34 = vld [vmem:[%s4580_s3 + $0x64] ss:$16 sps:$4 sm:$0xff]  }
   0x9   :  { %217 = vmatpush1.bf16.msra.mxu1 %v3070_v17  ;;  %v3088_v35 = vld [vmem:[%s4580_s3 + $0x48] ss:$16 sps:$4 sm:$0xff]   ;;  %v3091_v36 = vld [vmem:[%s4580_s3 + $0x60] ss:$16 sps:$4 sm:$0xff]   ;;  %v3096_v37 = vld [vmem:[%s4580_s3 + $0x6c] ss:$16 sps:$4 sm:$0xff]  }
   0xa   :  { %218 = vmatprep.subr.bf16.mxu1 %v169_v21  ;;  %v3099_v38 = vld [vmem:[%s4580_s3 + $0x84] ss:$16 sps:$4 sm:$0xff]   ;;  %v3094_v39 = vld [vmem:[%s4580_s3 + $0x68] ss:$16 sps:$4 sm:$0xff]   ;;  %v3097_v40 = vld [vmem:[%s4580_s3 + $0x80] ss:$16 sps:$4 sm:$0xff]  }
   0xb   :  { %176 = vmatpush1.bf16.msra.mxu0 %v160_v16  ;;  %v3102_v41 = vld [vmem:[%s4580_s3 + $0x8c] ss:$16 sps:$4 sm:$0xff]   ;;  %v3105_v42 = vld [vmem:[%s4580_s3 + $0xa4] ss:$16 sps:$4 sm:$0xff]   ;;  %v3100_v43 = vld [vmem:[%s4580_s3 + $0x88] ss:$16 sps:$4 sm:$0xff]  }
   0xc   :  { %1059 = vmatprep.subr.bf16.mxu0 %v3075_v20  ;;  %v3103_v44 = vld [vmem:[%s4580_s3 + $0xa0] ss:$16 sps:$4 sm:$0xff]   ;;  %v3108_v45 = vld [vmem:[%s4580_s3 + $0xac] ss:$16 sps:$4 sm:$0xff]   ;;  %v3111_v46 = vld [vmem:[%s4580_s3 + $0xc4] ss:$16 sps:$4 sm:$0xff]  }
   0xd   :  { %219 = vmatpush1.bf16.msra.mxu1 %v166_v24  ;;  %v3106_v47 = vld [vmem:[%s4580_s3 + $0xa8] ss:$16 sps:$4 sm:$0xff]   ;;  %v3109_v48 = vld [vmem:[%s4580_s3 + $0xc0] ss:$16 sps:$4 sm:$0xff]   ;;  %v3114_v49 = vld [vmem:[%s4580_s3 + $0xcc] ss:$16 sps:$4 sm:$0xff]  }
   0xe   :  { %2625 = vmatmul.mubr.msk.bf16.vlgmr.msra.gmra.mrb[0].mxu0 %vm151_vm2, %v3064_v22  ;;  %1145 = vmatprep.subr.bf16.mxu1 %v3078_v25  ;;  %v3117_v50 = vld [vmem:[%s4580_s3 + $0xe4] ss:$16 sps:$4 sm:$0xff]   ;;  %v3112_v51 = vld [vmem:[%s4580_s3 + $0xc8] ss:$16 sps:$4 sm:$0xff]   ;;  %v3115_v52 = vld [vmem:[%s4580_s3 + $0xe0] ss:$16 sps:$4 sm:$0xff]   ;;  %v76_v25 = vlaneseq }
   0xf   :  { %1060 = vmatpush1.bf16.msra.mxu0 %v3073_v23  ;;  %v3120_v53 = vld [vmem:[%s4580_s3 + $0xec] ss:$16 sps:$4 sm:$0xff]   ;;  %v3123_v54 = vld [vmem:[%s4580_s3 + $0x104] ss:$16 sps:$4 sm:$0xff]   ;;  %v3118_v55 = vld [vmem:[%s4580_s3 + $0xe8] ss:$16 sps:$4 sm:$0xff]  }
  0x10   :  { %1061 = vmatprep.subr.bf16.mxu0 %v3081_v26  ;;  %2626 = vmatmul.mubr.msk.bf16.vlgmr.msra.gmra.mrb[0].mxu1 %vm151_vm2, %v3064_v22  ;;  %v3121_v56 = vld [vmem:[%s4580_s3 + $0x100] ss:$16 sps:$4 sm:$0xff]   ;;  %v3126_v57 = vld [vmem:[%s4580_s3 + $0x10c] ss:$16 sps:$4 sm:$0xff]   ;;  %v3129_v58 = vld [vmem:[%s4580_s3 + $0x124] ss:$16 sps:$4 sm:$0xff]  }
  0x11   :  { %1146 = vmatpush1.bf16.msra.mxu1 %v3076_v27  ;;  %v3124_v59 = vld [vmem:[%s4580_s3 + $0x108] ss:$16 sps:$4 sm:$0xff]   ;;  %v3127_v60 = vld [vmem:[%s4580_s3 + $0x120] ss:$16 sps:$4 sm:$0xff]   ;;  %v3132_v61 = vld [vmem:[%s4580_s3 + $0x12c] ss:$16 sps:$4 sm:$0xff]  }
  0x12   :  { %1147 = vmatprep.subr.bf16.mxu1 %v3084_v29  ;;  %v3135_v62 = vld [vmem:[%s4580_s3 + $0x144] ss:$16 sps:$4 sm:$0xff]   ;;  %v3130_v63 = vld [vmem:[%s4580_s3 + $0x128] ss:$16 sps:$4 sm:$0xff]   ;;  %v3133_v0 = vld [vmem:[%s4580_s3 + $0x140] ss:$16 sps:$4 sm:$0xff]  }
  0x13   :  { %1062 = vmatpush1.bf16.msra.mxu0 %v3079_v28  ;;  %v3138_v1 = vld [vmem:[%s4580_s3 + $0x14c] ss:$16 sps:$4 sm:$0xff]   ;;  %v3141_v2 = vld [vmem:[%s4580_s3 + $0x164] ss:$16 sps:$4 sm:$0xff]   ;;  %v3136_v3 = vld [vmem:[%s4580_s3 + $0x148] ss:$16 sps:$4 sm:$0xff]  }
  0x14   :  { %1063 = vmatprep.subr.bf16.mxu0 %v3087_v30  ;;  %v3139_v4 = vld [vmem:[%s4580_s3 + $0x160] ss:$16 sps:$4 sm:$0xff]   ;;  %v3144_v5 = vld [vmem:[%s4580_s3 + $0x16c] ss:$16 sps:$4 sm:$0xff]   ;;  %v3147_v6 = vld [vmem:[%s4580_s3 + $0x184] ss:$16 sps:$4 sm:$0xff]  }
  0x15   :  { %1148 = vmatpush1.bf16.msra.mxu1 %v3082_v31  ;;  %v3142_v7 = vld [vmem:[%s4580_s3 + $0x168] ss:$16 sps:$4 sm:$0xff]   ;;  %v3145_v8 = vld [vmem:[%s4580_s3 + $0x180] ss:$16 sps:$4 sm:$0xff]   ;;  %v3150_v9 = vld [vmem:[%s4580_s3 + $0x18c] ss:$16 sps:$4 sm:$0xff]  }
  0x16   :  { %1149 = vmatprep.subr.bf16.mxu1 %v3090_v33  ;;  %v3153_v10 = vld [vmem:[%s4580_s3 + $0x1a4] ss:$16 sps:$4 sm:$0xff]   ;;  %v3148_v11 = vld [vmem:[%s4580_s3 + $0x188] ss:$16 sps:$4 sm:$0xff]   ;;  %v3151_v12 = vld [vmem:[%s4580_s3 + $0x1a0] ss:$16 sps:$4 sm:$0xff]  }
  0x17   :  { %1064 = vmatpush1.bf16.msra.mxu0 %v3085_v32  ;;  %v3156_v13 = vld [vmem:[%s4580_s3 + $0x1ac] ss:$16 sps:$4 sm:$0xff]   ;;  %v3154_v14 = vld [vmem:[%s4580_s3 + $0x1a8] ss:$16 sps:$4 sm:$0xff]   ;;  %v3159_v15 = vld [vmem:[%s4580_s3 + $0x1c4] ss:$16 sps:$4 sm:$0xff]  }
  0x18   :  { %1065 = vmatprep.subr.bf16.mxu0 %v3093_v34  ;;  %v3162_v16 = vld [vmem:[%s4580_s3 + $0x1cc] ss:$16 sps:$4 sm:$0xff]   ;;  %v3157_v17 = vld [vmem:[%s4580_s3 + $0x1c0] ss:$16 sps:$4 sm:$0xff]   ;;  %v3160_v18 = vld [vmem:[%s4580_s3 + $0x1c8] ss:$16 sps:$4 sm:$0xff]  }
  0x19   :  { %1150 = vmatpush1.bf16.msra.mxu1 %v3088_v35  ;;  %v3165_v19 = vld [vmem:[%s4580_s3 + $0x1e4] ss:$16 sps:$4 sm:$0xff]   ;;  %v3168_v20 = vld [vmem:[%s4580_s3 + $0x1ec] ss:$16 sps:$4 sm:$0xff]   ;;  %v3163_v21 = vld [vmem:[%s4580_s3 + $0x1e0] ss:$16 sps:$4 sm:$0xff]  }
  0x1a   :  { %1151 = vmatprep.subr.bf16.mxu1 %v3096_v37  ;;  %v3166_v22 = vld [vmem:[%s4580_s3 + $0x1e8] ss:$16 sps:$4 sm:$0xff]   ;;  %v3171_v23 = vld [vmem:[%s4580_s3 + $0x204] ss:$16 sps:$4 sm:$0xff]   ;;  %v3174_v24 = vld [vmem:[%s4580_s3 + $0x20c] ss:$16 sps:$4 sm:$0xff]  }
  0x1b   :  { %1066 = vmatpush1.bf16.msra.mxu0 %v3091_v36  ;;  %v3750_v26 = vshrl.u32 %v76_v25, 7  ;;  %v74_v27 = vld [vmem:[%s4582_s2] sm:$0xf]  ;;  %vm2270_vm3 = vcmp.lt.s32.totalorder %v76_v25, 512 }
  0x1c   :  { %1067 = vmatprep.subr.bf16.mxu0 %v3099_v38 }
  0x1d   :  { %1152 = vmatpush1.bf16.msra.mxu1 %v3094_v39  ;;  %v3756_v28 = vsub.s32 0, %v3750_v26  ;;  %v3759_v29 = vsub.s32 1, %v3750_v26  ;;  %v3763_v31 = vsub.s32 2, %v3750_v26  ;;  %v3767_v33 = vsub.s32 3, %v3750_v26 }
  0x1e   :  { %1153 = vmatprep.subr.bf16.mxu1 %v3102_v41 }
  0x1f   :  { %1068 = vmatpush1.bf16.msra.mxu0 %v3097_v40  ;;  %v79_v30 = vrot.slane %v74_v27, %v3756_v28  ;;  %v83_v32 = vrot.slane %v74_v27, %v3759_v29  ;;  %v87_v37 = vrot.slane %v74_v27, %v3763_v31  ;;  %v91_v40 = vrot.slane %v74_v27, %v3767_v33  ;;  %v3208_v27 = vld [vmem:[%s4580_s3 + $0x2c8] ss:$16 sps:$4 sm:$0xff]  }
  0x20   :  { %1069 = vmatprep.subr.bf16.mxu0 %v3105_v42 }
  0x21   :  { %1154 = vmatpush1.bf16.msra.mxu1 %v3100_v43 }
  0x22   :  { %1155 = vmatprep.subr.bf16.mxu1 %v3108_v45 }
  0x23   :  { %1070 = vmatpush1.bf16.msra.mxu0 %v3103_v44 }
  0x24   :  { %1071 = vmatprep.subr.bf16.mxu0 %v3111_v46 }
  0x25   :  { %1156 = vmatpush1.bf16.msra.mxu1 %v3106_v47 }
  0x26   :  { %1157 = vmatprep.subr.bf16.mxu1 %v3114_v49 }
  0x27   :  { %1072 = vmatpush1.bf16.msra.mxu0 %v3109_v48 }
  0x28   :  { %1073 = vmatprep.subr.bf16.mxu0 %v3117_v50 }
  0x29   :  { %1158 = vmatpush1.bf16.msra.mxu1 %v3112_v51  ;;  %v3169_v51 = vld [vmem:[%s4580_s3 + $0x200] ss:$16 sps:$4 sm:$0xff]  }
  0x2a   :  { %1159 = vmatprep.subr.bf16.mxu1 %v3120_v53 }
  0x2b   :  { %1074 = vmatpush1.bf16.msra.mxu0 %v3115_v52  ;;  %v3172_v52 = vld [vmem:[%s4580_s3 + $0x208] ss:$16 sps:$4 sm:$0xff]  }
  0x2c   :  { %1075 = vmatprep.subr.bf16.mxu0 %v3123_v54 }
  0x2d   :  { %1160 = vmatpush1.bf16.msra.mxu1 %v3118_v55 }
  0x2e   :  { %1161 = vmatprep.subr.bf16.mxu1 %v3126_v57 }
  0x2f   :  { %1076 = vmatpush1.bf16.msra.mxu0 %v3121_v56  ;;  %v3177_v56 = vld [vmem:[%s4580_s3 + $0x224] ss:$16 sps:$4 sm:$0xff]  }
  0x30   :  { %1077 = vmatprep.subr.bf16.mxu0 %v3129_v58 }
  0x31   :  { %1162 = vmatpush1.bf16.msra.mxu1 %v3124_v59 }
  0x32   :  { %1163 = vmatprep.subr.bf16.mxu1 %v3132_v61 }
  0x33   :  { %1078 = vmatpush1.bf16.msra.mxu0 %v3127_v60 }
  0x34   :  { %1079 = vmatprep.subr.bf16.mxu0 %v3135_v62 }
  0x35   :  { %1164 = vmatpush1.bf16.msra.mxu1 %v3130_v63  ;;  %v3180_v63 = vld [vmem:[%s4580_s3 + $0x22c] ss:$16 sps:$4 sm:$0xff]  }
  0x36   :  { %1165 = vmatprep.subr.bf16.mxu1 %v3138_v1 }
  0x37   :  { %1080 = vmatpush1.bf16.msra.mxu0 %v3133_v0 }
  0x38   :  { %1081 = vmatprep.subr.bf16.mxu0 %v3141_v2 }
  0x39   :  { %1166 = vmatpush1.bf16.msra.mxu1 %v3136_v3  ;;  %v3175_v3 = vld [vmem:[%s4580_s3 + $0x220] ss:$16 sps:$4 sm:$0xff]  }
  0x3a   :  { %1167 = vmatprep.subr.bf16.mxu1 %v3144_v5 }
  0x3b   :  { %1082 = vmatpush1.bf16.msra.mxu0 %v3139_v4  ;;  %v3178_v4 = vld [vmem:[%s4580_s3 + $0x228] ss:$16 sps:$4 sm:$0xff]  }
  0x3c   :  { %1083 = vmatprep.subr.bf16.mxu0 %v3147_v6  ;;  %v3183_v6 = vld [vmem:[%s4580_s3 + $0x244] ss:$16 sps:$4 sm:$0xff]  }
  0x3d   :  { %1168 = vmatpush1.bf16.msra.mxu1 %v3142_v7  ;;  %v3186_v7 = vld [vmem:[%s4580_s3 + $0x24c] ss:$16 sps:$4 sm:$0xff]  }
  0x3e   :  { %1169 = vmatprep.subr.bf16.mxu1 %v3150_v9  ;;  %v3184_v9 = vld [vmem:[%s4580_s3 + $0x248] ss:$16 sps:$4 sm:$0xff]  }
  0x3f   :  { %1084 = vmatpush1.bf16.msra.mxu0 %v3145_v8  ;;  %v3181_v8 = vld [vmem:[%s4580_s3 + $0x240] ss:$16 sps:$4 sm:$0xff]  }
  0x40   :  { %1085 = vmatprep.subr.bf16.mxu0 %v3153_v10  ;;  %v3189_v10 = vld [vmem:[%s4580_s3 + $0x264] ss:$16 sps:$4 sm:$0xff]  }
  0x41   :  { %1170 = vmatpush1.bf16.msra.mxu1 %v3148_v11  ;;  %v3192_v11 = vld [vmem:[%s4580_s3 + $0x26c] ss:$16 sps:$4 sm:$0xff]  }
  0x42   :  { %1171 = vmatprep.subr.bf16.mxu1 %v3156_v13  ;;  %v3190_v13 = vld [vmem:[%s4580_s3 + $0x268] ss:$16 sps:$4 sm:$0xff]  }
  0x43   :  { %1086 = vmatpush1.bf16.msra.mxu0 %v3151_v12  ;;  %v3187_v12 = vld [vmem:[%s4580_s3 + $0x260] ss:$16 sps:$4 sm:$0xff]  }
  0x44   :  { %1087 = vmatprep.subr.bf16.mxu0 %v3159_v15  ;;  %v3198_v15 = vld [vmem:[%s4580_s3 + $0x28c] ss:$16 sps:$4 sm:$0xff]  }
  0x45   :  { %1172 = vmatpush1.bf16.msra.mxu1 %v3154_v14  ;;  %v3195_v14 = vld [vmem:[%s4580_s3 + $0x284] ss:$16 sps:$4 sm:$0xff]  }
  0x46   :  { %1173 = vmatprep.subr.bf16.mxu1 %v3162_v16  ;;  %v3193_v16 = vld [vmem:[%s4580_s3 + $0x280] ss:$16 sps:$4 sm:$0xff]  }
  0x47   :  { %1088 = vmatpush1.bf16.msra.mxu0 %v3157_v17  ;;  %v3196_v17 = vld [vmem:[%s4580_s3 + $0x288] ss:$16 sps:$4 sm:$0xff]  }
  0x48   :  { %1089 = vmatprep.subr.bf16.mxu0 %v3165_v19  ;;  %v3204_v19 = vld [vmem:[%s4580_s3 + $0x2ac] ss:$16 sps:$4 sm:$0xff]  }
  0x49   :  { %1174 = vmatpush1.bf16.msra.mxu1 %v3160_v18  ;;  %v3201_v18 = vld [vmem:[%s4580_s3 + $0x2a4] ss:$16 sps:$4 sm:$0xff]  }
  0x4a   :  { %1175 = vmatprep.subr.bf16.mxu1 %v3168_v20  ;;  %v3199_v20 = vld [vmem:[%s4580_s3 + $0x2a0] ss:$16 sps:$4 sm:$0xff]  }
  0x4b   :  { %1090 = vmatpush1.bf16.msra.mxu0 %v3163_v21  ;;  %v3202_v21 = vld [vmem:[%s4580_s3 + $0x2a8] ss:$16 sps:$4 sm:$0xff]  }
  0x4c   :  { %1102 = vmatprep.subr.bf16.mxu0 %v3171_v23  ;;  %v3210_v23 = vld [vmem:[%s4580_s3 + $0x2cc] ss:$16 sps:$4 sm:$0xff]  }
  0x4d   :  { %1176 = vmatpush1.bf16.msra.mxu1 %v3166_v22  ;;  %v3207_v22 = vld [vmem:[%s4580_s3 + $0x2c4] ss:$16 sps:$4 sm:$0xff]  }
  0x4e   :  { %1188 = vmatprep.subr.bf16.mxu1 %v3174_v24  ;;  %v3205_v24 = vld [vmem:[%s4580_s3 + $0x2c0] ss:$16 sps:$4 sm:$0xff]  }
  0xe1   :  { %v205_v34 = vpop.f32.mrb[0].mxu0 }
  0xe2   :  { %v206_v35 = vadd.f32 %v205_v34, %v79_v30  ;;  %v207_v36 = vpop.f32.mrb[1].mxu0  ;;  %v3211_v34 = vld [vmem:[%s4580_s3 + $0x2e0] ss:$16 sps:$4 sm:$0xff]  }
  0xe3   :  { %v208_v38 = vadd.f32 %v207_v36, %v83_v32  ;;  %v209_v39 = vpop.f32.mrb[2].mxu0  ;;  %v248_v44 = vpop.f32.mrb[0].mxu1  ;;  %v3219_v36 = vld [vmem:[%s4580_s3 + $0x304] ss:$16 sps:$4 sm:$0xff]  }
  0xe4   :  { %v210_v41 = vadd.f32 %v209_v39, %v79_v30  ;;  %v211_v42 = vpop.f32.mrb[3].mxu0  ;;  %v257_v45 = vmax.f32 %v206_v35, 0.0  ;;  %v249_v47 = vadd.f32 %v248_v44, %v87_v37  ;;  %v250_v48 = vpop.f32.mrb[1].mxu1  ;;  %v3213_v30 = vld [vmem:[%s4580_s3 + $0x2e4] ss:$16 sps:$4 sm:$0xff]  }
  0xe5   :  { %v212_v43 = vadd.f32 %v211_v42, %v83_v32  ;;  %v258_v49 = vmax.f32 %v208_v38, 0.0  ;;  %v251_v53 = vadd.f32 %v250_v48, %v91_v40  ;;  %v252_v54 = vpop.f32.mrb[2].mxu1  ;;  %v3216_v32 = vld [vmem:[%s4580_s3 + $0x2ec] ss:$16 sps:$4 sm:$0xff]   ;;  %v3214_v35 = vld [vmem:[%s4580_s3 + $0x2e8] ss:$16 sps:$4 sm:$0xff]  }
  0xe6   :  { %v261_v46 = vmax.f32 %v210_v41, 0.0  ;;  %v259_v57 = vmax.f32 %v249_v47, 0.0  ;;  %v253_v58 = vadd.f32 %v252_v54, %v87_v37  ;;  %v254_v59 = vpop.f32.mrb[3].mxu1  ;;  %v3222_v37 = vld [vmem:[%s4580_s3 + $0x30c] ss:$16 sps:$4 sm:$0xff]  }
  0xe7   :  { %v262_v50 = vmax.f32 %v212_v43, 0.0  ;;  %v260_v61 = vmax.f32 %v251_v53, 0.0  ;;  %v255_v62 = vadd.f32 %v254_v59, %v91_v40  ;;  %v3217_v38 = vld [vmem:[%s4580_s3 + $0x300] ss:$16 sps:$4 sm:$0xff]   ;;  %v3220_v39 = vld [vmem:[%s4580_s3 + $0x308] ss:$16 sps:$4 sm:$0xff]  }
  0xe8   :  { %v265_v55 = vpack.c.bf16 %v261_v46, %v257_v45  ;;  %v263_v0 = vmax.f32 %v253_v58, 0.0  ;;  %v3225_v40 = vld [vmem:[%s4580_s3 + $0x324] ss:$16 sps:$4 sm:$0xff]   ;;  %v3228_v41 = vld [vmem:[%s4580_s3 + $0x32c] ss:$16 sps:$4 sm:$0xff]  }
  0xe9   :  { %v266_v60 = vpack.c.bf16 %v262_v50, %v258_v49  ;;  %v264_v1 = vmax.f32 %v255_v62, 0.0  ;;  %v3223_v42 = vld [vmem:[%s4580_s3 + $0x320] ss:$16 sps:$4 sm:$0xff]   ;;  %v3226_v43 = vld [vmem:[%s4580_s3 + $0x328] ss:$16 sps:$4 sm:$0xff]  }
  0xea   :  { %v3783_v2 = vpack.c.bf16 %v263_v0, %v259_v57  ;;  %v3231_v44 = vld [vmem:[%s4580_s3 + $0x344] ss:$16 sps:$4 sm:$0xff]   ;;  %v3234_v45 = vld [vmem:[%s4580_s3 + $0x34c] ss:$16 sps:$4 sm:$0xff]   ;;  %v3229_v46 = vld [vmem:[%s4580_s3 + $0x340] ss:$16 sps:$4 sm:$0xff]  }
  0xeb   :  { %1091 = vmatprep.mubr.bf16.mxu0 %v266_v60  ;;  %1177 = vmatprep.mubr.bf16.mxu1 %v266_v60  ;;  %v268_v5 = vpack.c.bf16 %v264_v1, %v260_v61  ;;  %v3232_v47 = vld [vmem:[%s4580_s3 + $0x348] ss:$16 sps:$4 sm:$0xff]   ;;  %v3237_v48 = vld [vmem:[%s4580_s3 + $0x364] ss:$16 sps:$4 sm:$0xff]   ;;  %v3240_v49 = vld [vmem:[%s4580_s3 + $0x36c] ss:$16 sps:$4 sm:$0xff]  }
  0xec   :  { %1092 = vmatmul.mubr.bf16.vlgmr.msra.gmra.mrb[4].mxu0 %v265_v55  ;;  %1178 = vmatmul.mubr.bf16.vlgmr.msra.gmra.mrb[4].mxu1 %v265_v55  ;;  %v3235_v50 = vld [vmem:[%s4580_s3 + $0x360] ss:$16 sps:$4 sm:$0xff]   ;;  %v3246_v53 = vld [vmem:[%s4580_s3 + $0x38c] ss:$16 sps:$4 sm:$0xff]   ;;  %v3244_v55 = vld [vmem:[%s4580_s3 + $0x388] ss:$16 sps:$4 sm:$0xff]  }
  0xed   :  { %1103 = vmatpush1.bf16.msra.mxu0 %v3169_v51  ;;  %1189 = vmatpush1.bf16.msra.mxu1 %v3172_v52  ;;  %v3238_v51 = vld [vmem:[%s4580_s3 + $0x368] ss:$16 sps:$4 sm:$0xff]   ;;  %v3243_v52 = vld [vmem:[%s4580_s3 + $0x384] ss:$16 sps:$4 sm:$0xff]   ;;  %v3241_v54 = vld [vmem:[%s4580_s3 + $0x380] ss:$16 sps:$4 sm:$0xff]  }
  0xee   :  { %1104 = vmatprep.subr.bf16.mxu0 %v3177_v56  ;;  %1190 = vmatprep.subr.bf16.mxu1 %v3180_v63  ;;  %v3249_v56 = vld [vmem:[%s4580_s3 + $0x3a4] ss:$16 sps:$4 sm:$0xff]   ;;  %v3252_v57 = vld [vmem:[%s4580_s3 + $0x3ac] ss:$16 sps:$4 sm:$0xff]   ;;  %v3247_v58 = vld [vmem:[%s4580_s3 + $0x3a0] ss:$16 sps:$4 sm:$0xff]  }
  0xef   :  { %1134 = vmatprep.mubr.bf16.mxu0 %v268_v5  ;;  %1220 = vmatprep.mubr.bf16.mxu1 %v268_v5  ;;  %v3250_v59 = vld [vmem:[%s4580_s3 + $0x3a8] ss:$16 sps:$4 sm:$0xff]   ;;  %v3255_v60 = vld [vmem:[%s4580_s3 + $0x3c4] ss:$16 sps:$4 sm:$0xff]   ;;  %v3258_v61 = vld [vmem:[%s4580_s3 + $0x3cc] ss:$16 sps:$4 sm:$0xff]  }
  0xf0   :  { %v3253_v62 = vld [vmem:[%s4580_s3 + $0x3c0] ss:$16 sps:$4 sm:$0xff]   ;;  %v3256_v63 = vld [vmem:[%s4580_s3 + $0x3c8] ss:$16 sps:$4 sm:$0xff]   ;;  %v3261_v0 = vld [vmem:[%s4580_s3 + $0x3e4] ss:$16 sps:$4 sm:$0xff]  }
  0xf1   :  { %1105 = vmatpush1.bf16.msra.mxu0 %v3175_v3  ;;  %1191 = vmatpush1.bf16.msra.mxu1 %v3178_v4  ;;  %v3264_v1 = vld [vmem:[%s4580_s3 + $0x3ec] ss:$16 sps:$4 sm:$0xff]   ;;  %v3259_v3 = vld [vmem:[%s4580_s3 + $0x3e0] ss:$16 sps:$4 sm:$0xff]   ;;  %v3262_v4 = vld [vmem:[%s4580_s3 + $0x3e8] ss:$16 sps:$4 sm:$0xff]  }
  0xf2   :  { %1106 = vmatprep.subr.bf16.mxu0 %v3183_v6  ;;  %1192 = vmatprep.subr.bf16.mxu1 %v3186_v7  ;;  %v3267_v5 = vld [vmem:[%s4581_s5 + $0x4] ss:$16 sps:$4 sm:$0xff]   ;;  %v3270_v6 = vld [vmem:[%s4581_s5 + $0xc] ss:$16 sps:$4 sm:$0xff]   ;;  %v3265_v7 = vld [vmem:[%s4581_s5] ss:$16 sps:$4 sm:$0xff]  }
  0xf5   :  { %1107 = vmatpush1.bf16.msra.mxu0 %v3181_v8  ;;  %1193 = vmatpush1.bf16.msra.mxu1 %v3184_v9  ;;  %v3268_v8 = vld [vmem:[%s4581_s5 + $0x8] ss:$16 sps:$4 sm:$0xff]   ;;  %v3273_v9 = vld [vmem:[%s4581_s5 + $0x24] ss:$16 sps:$4 sm:$0xff]  }
  0xf6   :  { %1108 = vmatprep.subr.bf16.mxu0 %v3189_v10  ;;  %1194 = vmatprep.subr.bf16.mxu1 %v3192_v11  ;;  %v3276_v10 = vld [vmem:[%s4581_s5 + $0x2c] ss:$16 sps:$4 sm:$0xff]   ;;  %v3271_v11 = vld [vmem:[%s4581_s5 + $0x20] ss:$16 sps:$4 sm:$0xff]  }
  0xf9   :  { %1109 = vmatpush1.bf16.msra.mxu0 %v3187_v12  ;;  %1195 = vmatpush1.bf16.msra.mxu1 %v3190_v13  ;;  %v3274_v12 = vld [vmem:[%s4581_s5 + $0x28] ss:$16 sps:$4 sm:$0xff]   ;;  %v3279_v13 = vld [vmem:[%s4581_s5 + $0x44] ss:$16 sps:$4 sm:$0xff]  }
  0xfa   :  { %1110 = vmatprep.subr.bf16.mxu0 %v3195_v14  ;;  %1196 = vmatprep.subr.bf16.mxu1 %v3198_v15  ;;  %v3277_v14 = vld [vmem:[%s4581_s5 + $0x40] ss:$16 sps:$4 sm:$0xff]   ;;  %v3280_v15 = vld [vmem:[%s4581_s5 + $0x48] ss:$16 sps:$4 sm:$0xff]  }
  0xfd   :  { %1111 = vmatpush1.bf16.msra.mxu0 %v3193_v16  ;;  %1197 = vmatpush1.bf16.msra.mxu1 %v3196_v17  ;;  %v3285_v16 = vld [vmem:[%s4581_s5 + $0x64] ss:$16 sps:$4 sm:$0xff]   ;;  %v3288_v17 = vld [vmem:[%s4581_s5 + $0x6c] ss:$16 sps:$4 sm:$0xff]  }
  0xfe   :  { %1112 = vmatprep.subr.bf16.mxu0 %v3201_v18  ;;  %1198 = vmatprep.subr.bf16.mxu1 %v3204_v19  ;;  %v3283_v18 = vld [vmem:[%s4581_s5 + $0x60] ss:$16 sps:$4 sm:$0xff]   ;;  %v3286_v19 = vld [vmem:[%s4581_s5 + $0x68] ss:$16 sps:$4 sm:$0xff]  }
 0x101   :  { %1113 = vmatpush1.bf16.msra.mxu0 %v3199_v20  ;;  %1199 = vmatpush1.bf16.msra.mxu1 %v3202_v21  ;;  %v3291_v20 = vld [vmem:[%s4581_s5 + $0x84] ss:$16 sps:$4 sm:$0xff]   ;;  %v3294_v21 = vld [vmem:[%s4581_s5 + $0x8c] ss:$16 sps:$4 sm:$0xff]  }
 0x102   :  { %1114 = vmatprep.subr.bf16.mxu0 %v3207_v22  ;;  %1200 = vmatprep.subr.bf16.mxu1 %v3210_v23  ;;  %v3289_v22 = vld [vmem:[%s4581_s5 + $0x80] ss:$16 sps:$4 sm:$0xff]   ;;  %v3292_v23 = vld [vmem:[%s4581_s5 + $0x88] ss:$16 sps:$4 sm:$0xff]  }
 0x105   :  { %1115 = vmatpush1.bf16.msra.mxu0 %v3205_v24  ;;  %1201 = vmatpush1.bf16.msra.mxu1 %v3208_v27  ;;  %v3297_v24 = vld [vmem:[%s4581_s5 + $0xa4] ss:$16 sps:$4 sm:$0xff]   ;;  %v3300_v27 = vld [vmem:[%s4581_s5 + $0xac] ss:$16 sps:$4 sm:$0xff]  }
 0x106   :  { %1116 = vmatprep.subr.bf16.mxu0 %v3213_v30  ;;  %1202 = vmatprep.subr.bf16.mxu1 %v3216_v32  ;;  %v3295_v30 = vld [vmem:[%s4581_s5 + $0xa0] ss:$16 sps:$4 sm:$0xff]   ;;  %v3298_v32 = vld [vmem:[%s4581_s5 + $0xa8] ss:$16 sps:$4 sm:$0xff]  }
 0x109   :  { %1117 = vmatpush1.bf16.msra.mxu0 %v3211_v34  ;;  %1203 = vmatpush1.bf16.msra.mxu1 %v3214_v35  ;;  %v3303_v34 = vld [vmem:[%s4581_s5 + $0xc4] ss:$16 sps:$4 sm:$0xff]   ;;  %v3306_v35 = vld [vmem:[%s4581_s5 + $0xcc] ss:$16 sps:$4 sm:$0xff]  }
 0x10a   :  { %1118 = vmatprep.subr.bf16.mxu0 %v3219_v36  ;;  %1204 = vmatprep.subr.bf16.mxu1 %v3222_v37  ;;  %v3301_v36 = vld [vmem:[%s4581_s5 + $0xc0] ss:$16 sps:$4 sm:$0xff]   ;;  %v3304_v37 = vld [vmem:[%s4581_s5 + $0xc8] ss:$16 sps:$4 sm:$0xff]  }
 0x10d   :  { %1119 = vmatpush1.bf16.msra.mxu0 %v3217_v38  ;;  %1205 = vmatpush1.bf16.msra.mxu1 %v3220_v39  ;;  %v3309_v38 = vld [vmem:[%s4581_s5 + $0xe4] ss:$16 sps:$4 sm:$0xff]   ;;  %v3312_v39 = vld [vmem:[%s4581_s5 + $0xec] ss:$16 sps:$4 sm:$0xff]  }
 0x10e   :  { %1120 = vmatprep.subr.bf16.mxu0 %v3225_v40  ;;  %1206 = vmatprep.subr.bf16.mxu1 %v3228_v41  ;;  %v3307_v40 = vld [vmem:[%s4581_s5 + $0xe0] ss:$16 sps:$4 sm:$0xff]   ;;  %v3310_v41 = vld [vmem:[%s4581_s5 + $0xe8] ss:$16 sps:$4 sm:$0xff]  }
 0x111   :  { %1121 = vmatpush1.bf16.msra.mxu0 %v3223_v42  ;;  %1207 = vmatpush1.bf16.msra.mxu1 %v3226_v43  ;;  %v3315_v42 = vld [vmem:[%s4581_s5 + $0x104] ss:$16 sps:$4 sm:$0xff]   ;;  %v3318_v43 = vld [vmem:[%s4581_s5 + $0x10c] ss:$16 sps:$4 sm:$0xff]  }
 0x112   :  { %1122 = vmatprep.subr.bf16.mxu0 %v3231_v44  ;;  %1208 = vmatprep.subr.bf16.mxu1 %v3234_v45  ;;  %v3313_v44 = vld [vmem:[%s4581_s5 + $0x100] ss:$16 sps:$4 sm:$0xff]   ;;  %v3316_v45 = vld [vmem:[%s4581_s5 + $0x108] ss:$16 sps:$4 sm:$0xff]  }
 0x115   :  { %1123 = vmatpush1.bf16.msra.mxu0 %v3229_v46  ;;  %1209 = vmatpush1.bf16.msra.mxu1 %v3232_v47  ;;  %v3321_v46 = vld [vmem:[%s4581_s5 + $0x124] ss:$16 sps:$4 sm:$0xff]   ;;  %v3324_v47 = vld [vmem:[%s4581_s5 + $0x12c] ss:$16 sps:$4 sm:$0xff]  }
 0x116   :  { %1124 = vmatprep.subr.bf16.mxu0 %v3237_v48  ;;  %1210 = vmatprep.subr.bf16.mxu1 %v3240_v49  ;;  %v3319_v48 = vld [vmem:[%s4581_s5 + $0x120] ss:$16 sps:$4 sm:$0xff]   ;;  %v3322_v49 = vld [vmem:[%s4581_s5 + $0x128] ss:$16 sps:$4 sm:$0xff]  }
 0x119   :  { %1125 = vmatpush1.bf16.msra.mxu0 %v3235_v50  ;;  %1211 = vmatpush1.bf16.msra.mxu1 %v3238_v51  ;;  %v3327_v50 = vld [vmem:[%s4581_s5 + $0x144] ss:$16 sps:$4 sm:$0xff]   ;;  %v3330_v51 = vld [vmem:[%s4581_s5 + $0x14c] ss:$16 sps:$4 sm:$0xff]  }
 0x11a   :  { %1126 = vmatprep.subr.bf16.mxu0 %v3243_v52  ;;  %1212 = vmatprep.subr.bf16.mxu1 %v3246_v53  ;;  %v3325_v52 = vld [vmem:[%s4581_s5 + $0x140] ss:$16 sps:$4 sm:$0xff]   ;;  %v3328_v53 = vld [vmem:[%s4581_s5 + $0x148] ss:$16 sps:$4 sm:$0xff]  }
 0x11d   :  { %1127 = vmatpush1.bf16.msra.mxu0 %v3241_v54  ;;  %1213 = vmatpush1.bf16.msra.mxu1 %v3244_v55  ;;  %v3333_v54 = vld [vmem:[%s4581_s5 + $0x164] ss:$16 sps:$4 sm:$0xff]   ;;  %v3336_v55 = vld [vmem:[%s4581_s5 + $0x16c] ss:$16 sps:$4 sm:$0xff]  }
 0x11e   :  { %1128 = vmatprep.subr.bf16.mxu0 %v3249_v56  ;;  %1214 = vmatprep.subr.bf16.mxu1 %v3252_v57  ;;  %v3331_v56 = vld [vmem:[%s4581_s5 + $0x160] ss:$16 sps:$4 sm:$0xff]   ;;  %v3334_v57 = vld [vmem:[%s4581_s5 + $0x168] ss:$16 sps:$4 sm:$0xff]  }
 0x121   :  { %1129 = vmatpush1.bf16.msra.mxu0 %v3247_v58  ;;  %1215 = vmatpush1.bf16.msra.mxu1 %v3250_v59  ;;  %v3339_v58 = vld [vmem:[%s4581_s5 + $0x184] ss:$16 sps:$4 sm:$0xff]   ;;  %v3342_v59 = vld [vmem:[%s4581_s5 + $0x18c] ss:$16 sps:$4 sm:$0xff]  }
 0x122   :  { %1130 = vmatprep.subr.bf16.mxu0 %v3255_v60  ;;  %1216 = vmatprep.subr.bf16.mxu1 %v3258_v61  ;;  %v3337_v60 = vld [vmem:[%s4581_s5 + $0x180] ss:$16 sps:$4 sm:$0xff]   ;;  %v3340_v61 = vld [vmem:[%s4581_s5 + $0x188] ss:$16 sps:$4 sm:$0xff]  }
 0x125   :  { %1131 = vmatpush1.bf16.msra.mxu0 %v3253_v62  ;;  %1217 = vmatpush1.bf16.msra.mxu1 %v3256_v63  ;;  %v3345_v62 = vld [vmem:[%s4581_s5 + $0x1a4] ss:$16 sps:$4 sm:$0xff]   ;;  %v3348_v63 = vld [vmem:[%s4581_s5 + $0x1ac] ss:$16 sps:$4 sm:$0xff]  }
 0x126   :  { %1132 = vmatprep.subr.bf16.mxu0 %v3261_v0  ;;  %1218 = vmatprep.subr.bf16.mxu1 %v3264_v1  ;;  %v3343_v0 = vld [vmem:[%s4581_s5 + $0x1a0] ss:$16 sps:$4 sm:$0xff]   ;;  %v3346_v1 = vld [vmem:[%s4581_s5 + $0x1a8] ss:$16 sps:$4 sm:$0xff]  }
 0x129   :  { %1133 = vmatpush1.bf16.msra.mxu0 %v3259_v3  ;;  %1219 = vmatpush1.bf16.msra.mxu1 %v3262_v4  ;;  %v3351_v3 = vld [vmem:[%s4581_s5 + $0x1c4] ss:$16 sps:$4 sm:$0xff]   ;;  %v3354_v4 = vld [vmem:[%s4581_s5 + $0x1cc] ss:$16 sps:$4 sm:$0xff]  }
 0x12a   :  { %2033 = vmatprep.subr.bf16.mxu0 %v3267_v5  ;;  %2119 = vmatprep.subr.bf16.mxu1 %v3270_v6  ;;  %v3349_v5 = vld [vmem:[%s4581_s5 + $0x1c0] ss:$16 sps:$4 sm:$0xff]   ;;  %v3352_v6 = vld [vmem:[%s4581_s5 + $0x1c8] ss:$16 sps:$4 sm:$0xff]  }
 0x12c   :  { %1135 = vmatmul.mubr.bf16.vlgmr.msra.gmra.mrb[4].mxu0 %v3783_v2  ;;  %1221 = vmatmul.mubr.bf16.vlgmr.msra.gmra.mrb[4].mxu1 %v3783_v2  ;;  %v3282_v2 = vld [vmem:[%s4581_s5 + $0x4c] ss:$16 sps:$4 sm:$0xff]  }
 0x12d   :  { %2034 = vmatpush1.bf16.msra.mxu0 %v3265_v7  ;;  %2120 = vmatpush1.bf16.msra.mxu1 %v3268_v8  ;;  %v3357_v7 = vld [vmem:[%s4581_s5 + $0x1e4] ss:$16 sps:$4 sm:$0xff]   ;;  %v3360_v8 = vld [vmem:[%s4581_s5 + $0x1ec] ss:$16 sps:$4 sm:$0xff]  }
 0x12e   :  { %2035 = vmatprep.subr.bf16.mxu0 %v3273_v9  ;;  %2121 = vmatprep.subr.bf16.mxu1 %v3276_v10  ;;  %v3355_v9 = vld [vmem:[%s4581_s5 + $0x1e0] ss:$16 sps:$4 sm:$0xff]   ;;  %v3358_v10 = vld [vmem:[%s4581_s5 + $0x1e8] ss:$16 sps:$4 sm:$0xff]  }
 0x131   :  { %2036 = vmatpush1.bf16.msra.mxu0 %v3271_v11  ;;  %2122 = vmatpush1.bf16.msra.mxu1 %v3274_v12  ;;  %v3363_v11 = vld [vmem:[%s4581_s5 + $0x204] ss:$16 sps:$4 sm:$0xff]   ;;  %v3366_v12 = vld [vmem:[%s4581_s5 + $0x20c] ss:$16 sps:$4 sm:$0xff]  }
 0x132   :  { %2037 = vmatprep.subr.bf16.mxu0 %v3279_v13  ;;  %2123 = vmatprep.subr.bf16.mxu1 %v3282_v2  ;;  %v397_v13 = vld [vmem:[%s4583_s4] sm:$0xf] }
 0x133   :  { %v402_v2 = vrot.slane %v397_v13, %v3756_v28 }
 0x135   :  { %2038 = vmatpush1.bf16.msra.mxu0 %v3277_v14  ;;  %2124 = vmatpush1.bf16.msra.mxu1 %v3280_v15  ;;  %v410_v14 = vrot.slane %v397_v13, %v3763_v31  ;;  %v406_v15 = vrot.slane %v397_v13, %v3759_v29 }
 0x136   :  { %2039 = vmatprep.subr.bf16.mxu0 %v3285_v16  ;;  %2125 = vmatprep.subr.bf16.mxu1 %v3288_v17  ;;  %v414_v16 = vrot.slane %v397_v13, %v3767_v33  ;;  %v3400_v13 = vld [vmem:[%s4581_s5 + $0x2c8] ss:$16 sps:$4 sm:$0xff]  }
 0x139   :  { %2040 = vmatpush1.bf16.msra.mxu0 %v3283_v18  ;;  %2126 = vmatpush1.bf16.msra.mxu1 %v3286_v19 }
 0x13a   :  { %2041 = vmatprep.subr.bf16.mxu0 %v3291_v20  ;;  %2127 = vmatprep.subr.bf16.mxu1 %v3294_v21 }
 0x13d   :  { %2042 = vmatpush1.bf16.msra.mxu0 %v3289_v22  ;;  %2128 = vmatpush1.bf16.msra.mxu1 %v3292_v23 }
 0x13e   :  { %2043 = vmatprep.subr.bf16.mxu0 %v3297_v24  ;;  %2129 = vmatprep.subr.bf16.mxu1 %v3300_v27 }
 0x141   :  { %2044 = vmatpush1.bf16.msra.mxu0 %v3295_v30  ;;  %2130 = vmatpush1.bf16.msra.mxu1 %v3298_v32 }
 0x142   :  { %2045 = vmatprep.subr.bf16.mxu0 %v3303_v34  ;;  %2131 = vmatprep.subr.bf16.mxu1 %v3306_v35 }
 0x145   :  { %2046 = vmatpush1.bf16.msra.mxu0 %v3301_v36  ;;  %2132 = vmatpush1.bf16.msra.mxu1 %v3304_v37 }
 0x146   :  { %2047 = vmatprep.subr.bf16.mxu0 %v3309_v38  ;;  %2133 = vmatprep.subr.bf16.mxu1 %v3312_v39 }
 0x149   :  { %2048 = vmatpush1.bf16.msra.mxu0 %v3307_v40  ;;  %2134 = vmatpush1.bf16.msra.mxu1 %v3310_v41 }
 0x14a   :  { %2049 = vmatprep.subr.bf16.mxu0 %v3315_v42  ;;  %2135 = vmatprep.subr.bf16.mxu1 %v3318_v43 }
 0x14d   :  { %2050 = vmatpush1.bf16.msra.mxu0 %v3313_v44  ;;  %2136 = vmatpush1.bf16.msra.mxu1 %v3316_v45 }
 0x14e   :  { %2051 = vmatprep.subr.bf16.mxu0 %v3321_v46  ;;  %2137 = vmatprep.subr.bf16.mxu1 %v3324_v47 }
 0x151   :  { %2052 = vmatpush1.bf16.msra.mxu0 %v3319_v48  ;;  %2138 = vmatpush1.bf16.msra.mxu1 %v3322_v49 }
 0x152   :  { %2053 = vmatprep.subr.bf16.mxu0 %v3327_v50  ;;  %2139 = vmatprep.subr.bf16.mxu1 %v3330_v51  ;;  %v3361_v51 = vld [vmem:[%s4581_s5 + $0x200] ss:$16 sps:$4 sm:$0xff]  }
 0x155   :  { %2054 = vmatpush1.bf16.msra.mxu0 %v3325_v52  ;;  %2140 = vmatpush1.bf16.msra.mxu1 %v3328_v53  ;;  %v3364_v52 = vld [vmem:[%s4581_s5 + $0x208] ss:$16 sps:$4 sm:$0xff]   ;;  %v3369_v53 = vld [vmem:[%s4581_s5 + $0x224] ss:$16 sps:$4 sm:$0xff]  }
 0x156   :  { %2055 = vmatprep.subr.bf16.mxu0 %v3333_v54  ;;  %2141 = vmatprep.subr.bf16.mxu1 %v3336_v55  ;;  %v3372_v54 = vld [vmem:[%s4581_s5 + $0x22c] ss:$16 sps:$4 sm:$0xff]   ;;  %v3367_v55 = vld [vmem:[%s4581_s5 + $0x220] ss:$16 sps:$4 sm:$0xff]  }
 0x159   :  { %2056 = vmatpush1.bf16.msra.mxu0 %v3331_v56  ;;  %2142 = vmatpush1.bf16.msra.mxu1 %v3334_v57  ;;  %v3370_v56 = vld [vmem:[%s4581_s5 + $0x228] ss:$16 sps:$4 sm:$0xff]   ;;  %v3375_v57 = vld [vmem:[%s4581_s5 + $0x244] ss:$16 sps:$4 sm:$0xff]  }
 0x15a   :  { %2057 = vmatprep.subr.bf16.mxu0 %v3339_v58  ;;  %2143 = vmatprep.subr.bf16.mxu1 %v3342_v59  ;;  %v3378_v58 = vld [vmem:[%s4581_s5 + $0x24c] ss:$16 sps:$4 sm:$0xff]   ;;  %v3373_v59 = vld [vmem:[%s4581_s5 + $0x240] ss:$16 sps:$4 sm:$0xff]  }
 0x15d   :  { %2058 = vmatpush1.bf16.msra.mxu0 %v3337_v60  ;;  %2144 = vmatpush1.bf16.msra.mxu1 %v3340_v61  ;;  %v3376_v60 = vld [vmem:[%s4581_s5 + $0x248] ss:$16 sps:$4 sm:$0xff]   ;;  %v3381_v61 = vld [vmem:[%s4581_s5 + $0x264] ss:$16 sps:$4 sm:$0xff]  }
 0x15e   :  { %2059 = vmatprep.subr.bf16.mxu0 %v3345_v62  ;;  %2145 = vmatprep.subr.bf16.mxu1 %v3348_v63  ;;  %v3384_v62 = vld [vmem:[%s4581_s5 + $0x26c] ss:$16 sps:$4 sm:$0xff]   ;;  %v3379_v63 = vld [vmem:[%s4581_s5 + $0x260] ss:$16 sps:$4 sm:$0xff]  }
 0x161   :  { %2060 = vmatpush1.bf16.msra.mxu0 %v3343_v0  ;;  %2146 = vmatpush1.bf16.msra.mxu1 %v3346_v1  ;;  %v3382_v0 = vld [vmem:[%s4581_s5 + $0x268] ss:$16 sps:$4 sm:$0xff]   ;;  %v3387_v1 = vld [vmem:[%s4581_s5 + $0x284] ss:$16 sps:$4 sm:$0xff]  }
 0x162   :  { %2061 = vmatprep.subr.bf16.mxu0 %v3351_v3  ;;  %2147 = vmatprep.subr.bf16.mxu1 %v3354_v4  ;;  %v3390_v3 = vld [vmem:[%s4581_s5 + $0x28c] ss:$16 sps:$4 sm:$0xff]   ;;  %v3385_v4 = vld [vmem:[%s4581_s5 + $0x280] ss:$16 sps:$4 sm:$0xff]  }
 0x165   :  { %2062 = vmatpush1.bf16.msra.mxu0 %v3349_v5  ;;  %2148 = vmatpush1.bf16.msra.mxu1 %v3352_v6  ;;  %v3388_v5 = vld [vmem:[%s4581_s5 + $0x288] ss:$16 sps:$4 sm:$0xff]   ;;  %v3393_v6 = vld [vmem:[%s4581_s5 + $0x2a4] ss:$16 sps:$4 sm:$0xff]  }
 0x166   :  { %2063 = vmatprep.subr.bf16.mxu0 %v3357_v7  ;;  %2149 = vmatprep.subr.bf16.mxu1 %v3360_v8  ;;  %v3396_v7 = vld [vmem:[%s4581_s5 + $0x2ac] ss:$16 sps:$4 sm:$0xff]   ;;  %v3391_v8 = vld [vmem:[%s4581_s5 + $0x2a0] ss:$16 sps:$4 sm:$0xff]  }
 0x169   :  { %2064 = vmatpush1.bf16.msra.mxu0 %v3355_v9  ;;  %2150 = vmatpush1.bf16.msra.mxu1 %v3358_v10  ;;  %v3394_v9 = vld [vmem:[%s4581_s5 + $0x2a8] ss:$16 sps:$4 sm:$0xff]   ;;  %v3399_v10 = vld [vmem:[%s4581_s5 + $0x2c4] ss:$16 sps:$4 sm:$0xff]  }
 0x16a   :  { %2076 = vmatprep.subr.bf16.mxu0 %v3363_v11  ;;  %2162 = vmatprep.subr.bf16.mxu1 %v3366_v12  ;;  %v3402_v11 = vld [vmem:[%s4581_s5 + $0x2cc] ss:$16 sps:$4 sm:$0xff]   ;;  %v3397_v12 = vld [vmem:[%s4581_s5 + $0x2c0] ss:$16 sps:$4 sm:$0xff]  }
 0x1ff   :  { %v1136_v17 = vpop.f32.mrb[4].mxu0  ;;  %v1222_v18 = vpop.f32.mrb[4].mxu1 }
 0x200   :  { %v3019_v19 = vadd.f32 %v1136_v17, %v402_v2  ;;  %v3023_v20 = vadd.f32 %v1222_v18, %v410_v14  ;;  %v1138_v21 = vpop.f32.mrb[5].mxu0  ;;  %v1224_v22 = vpop.f32.mrb[5].mxu1  ;;  %v3411_v17 = vld [vmem:[%s4581_s5 + $0x304] ss:$16 sps:$4 sm:$0xff]   ;;  %v3414_v18 = vld [vmem:[%s4581_s5 + $0x30c] ss:$16 sps:$4 sm:$0xff]  }
 0x201   :  { %v3020_v23 = vadd.f32 %v1138_v21, %v406_v15  ;;  %v3024_v24 = vadd.f32 %v1224_v22, %v414_v16  ;;  %v1140_v27 = vpop.f32.mrb[6].mxu0  ;;  %v1226_v30 = vpop.f32.mrb[6].mxu1  ;;  %v3417_v21 = vld [vmem:[%s4581_s5 + $0x324] ss:$16 sps:$4 sm:$0xff]   ;;  %v3420_v22 = vld [vmem:[%s4581_s5 + $0x32c] ss:$16 sps:$4 sm:$0xff]  }
 0x202   :  { %v3021_v32 = vadd.f32 %v1140_v27, %v402_v2  ;;  %v3025_v34 = vadd.f32 %v1226_v30, %v410_v14  ;;  %v1142_v35 = vpop.f32.mrb[7].mxu0  ;;  %v1228_v36 = vpop.f32.mrb[7].mxu1  ;;  %v1231_v39 = vmax.f32 %v3019_v19, 0.0  ;;  %v1233_v40 = vmax.f32 %v3023_v20, 0.0  ;;  %v3405_v2 = vld [vmem:[%s4581_s5 + $0x2e4] ss:$16 sps:$4 sm:$0xff]  }
 0x203   :  { %v3022_v37 = vadd.f32 %v1142_v35, %v406_v15  ;;  %v3026_v38 = vadd.f32 %v1228_v36, %v414_v16  ;;  %v1232_v43 = vmax.f32 %v3020_v23, 0.0  ;;  %v1234_v44 = vmax.f32 %v3024_v24, 0.0  ;;  %v3408_v14 = vld [vmem:[%s4581_s5 + $0x2ec] ss:$16 sps:$4 sm:$0xff]   ;;  %v3403_v15 = vld [vmem:[%s4581_s5 + $0x2e0] ss:$16 sps:$4 sm:$0xff]  }
 0x204   :  { %v1235_v41 = vmax.f32 %v3021_v32, 0.0  ;;  %v1237_v42 = vmax.f32 %v3025_v34, 0.0  ;;  %v3406_v16 = vld [vmem:[%s4581_s5 + $0x2e8] ss:$16 sps:$4 sm:$0xff]   ;;  %v3409_v19 = vld [vmem:[%s4581_s5 + $0x300] ss:$16 sps:$4 sm:$0xff]  }
 0x205   :  { %v1236_v45 = vmax.f32 %v3022_v37, 0.0  ;;  %v1238_v46 = vmax.f32 %v3026_v38, 0.0  ;;  %v3412_v20 = vld [vmem:[%s4581_s5 + $0x308] ss:$16 sps:$4 sm:$0xff]   ;;  %v3415_v23 = vld [vmem:[%s4581_s5 + $0x320] ss:$16 sps:$4 sm:$0xff]  }
 0x206   :  { %v1239_v47 = vpack.c.bf16 %v1235_v41, %v1231_v39  ;;  %v4166_v48 = vpack.c.bf16 %v1237_v42, %v1233_v40  ;;  %v3418_v24 = vld [vmem:[%s4581_s5 + $0x328] ss:$16 sps:$4 sm:$0xff]   ;;  %v3423_v27 = vld [vmem:[%s4581_s5 + $0x344] ss:$16 sps:$4 sm:$0xff]   ;;  %v3426_v30 = vld [vmem:[%s4581_s5 + $0x34c] ss:$16 sps:$4 sm:$0xff]  }
 0x207   :  { %v1240_v49 = vpack.c.bf16 %v1236_v45, %v1232_v43  ;;  %v1242_v50 = vpack.c.bf16 %v1238_v46, %v1234_v44  ;;  %v3421_v32 = vld [vmem:[%s4581_s5 + $0x340] ss:$16 sps:$4 sm:$0xff]   ;;  %v3424_v34 = vld [vmem:[%s4581_s5 + $0x348] ss:$16 sps:$4 sm:$0xff]   ;;  %v3429_v35 = vld [vmem:[%s4581_s5 + $0x364] ss:$16 sps:$4 sm:$0xff]  }
 0x208   :  { %v3432_v36 = vld [vmem:[%s4581_s5 + $0x36c] ss:$16 sps:$4 sm:$0xff]   ;;  %v3427_v37 = vld [vmem:[%s4581_s5 + $0x360] ss:$16 sps:$4 sm:$0xff]   ;;  %v3430_v38 = vld [vmem:[%s4581_s5 + $0x368] ss:$16 sps:$4 sm:$0xff]  }
 0x209   :  { %2065 = vmatprep.mubr.bf16.mxu0 %v1240_v49  ;;  %2151 = vmatprep.mubr.bf16.mxu1 %v1240_v49  ;;  %v3435_v39 = vld [vmem:[%s4581_s5 + $0x384] ss:$16 sps:$4 sm:$0xff]   ;;  %v3438_v40 = vld [vmem:[%s4581_s5 + $0x38c] ss:$16 sps:$4 sm:$0xff]   ;;  %v3433_v41 = vld [vmem:[%s4581_s5 + $0x380] ss:$16 sps:$4 sm:$0xff]  }
 0x20a   :  { %2066 = vmatmul.mubr.bf16.vlgmr.msra.gmra.mrb[8].mxu0 %v1239_v47  ;;  %2152 = vmatmul.mubr.bf16.vlgmr.msra.gmra.mrb[8].mxu1 %v1239_v47  ;;  %v3436_v42 = vld [vmem:[%s4581_s5 + $0x388] ss:$16 sps:$4 sm:$0xff]   ;;  %v3441_v43 = vld [vmem:[%s4581_s5 + $0x3a4] ss:$16 sps:$4 sm:$0xff]   ;;  %v3444_v44 = vld [vmem:[%s4581_s5 + $0x3ac] ss:$16 sps:$4 sm:$0xff]  }
 0x20b   :  { %2077 = vmatpush1.bf16.msra.mxu0 %v3361_v51  ;;  %2163 = vmatpush1.bf16.msra.mxu1 %v3364_v52  ;;  %v3439_v45 = vld [vmem:[%s4581_s5 + $0x3a0] ss:$16 sps:$4 sm:$0xff]   ;;  %v3442_v46 = vld [vmem:[%s4581_s5 + $0x3a8] ss:$16 sps:$4 sm:$0xff]   ;;  %v3447_v47 = vld [vmem:[%s4581_s5 + $0x3c4] ss:$16 sps:$4 sm:$0xff]  }
 0x20c   :  { %2108 = vmatprep.mubr.bf16.mxu0 %v1242_v50  ;;  %2194 = vmatprep.mubr.bf16.mxu1 %v1242_v50  ;;  %v3450_v49 = vld [vmem:[%s4581_s5 + $0x3cc] ss:$16 sps:$4 sm:$0xff]   ;;  %v3445_v50 = vld [vmem:[%s4581_s5 + $0x3c0] ss:$16 sps:$4 sm:$0xff]   ;;  %v3448_v51 = vld [vmem:[%s4581_s5 + $0x3c8] ss:$16 sps:$4 sm:$0xff]  }
 0x20d   :  { %2078 = vmatprep.subr.bf16.mxu0 %v3369_v53  ;;  %2164 = vmatprep.subr.bf16.mxu1 %v3372_v54  ;;  %v3453_v52 = vld [vmem:[%s4581_s5 + $0x3e4] ss:$16 sps:$4 sm:$0xff]   ;;  %v3456_v53 = vld [vmem:[%s4581_s5 + $0x3ec] ss:$16 sps:$4 sm:$0xff]   ;;  %v3451_v54 = vld [vmem:[%s4581_s5 + $0x3e0] ss:$16 sps:$4 sm:$0xff]  }
 0x20f   :  { %2079 = vmatpush1.bf16.msra.mxu0 %v3367_v55  ;;  %2165 = vmatpush1.bf16.msra.mxu1 %v3370_v56  ;;  %v3454_v55 = vld [vmem:[%s4581_s5 + $0x3e8] ss:$16 sps:$4 sm:$0xff]   ;;  %v2351_v56 = vld [vmem:[%s4584_s7 + $0x80] sm:$0xff] }
 0x210   :  { %2080 = vmatprep.subr.bf16.mxu0 %v3375_v57  ;;  %2166 = vmatprep.subr.bf16.mxu1 %v3378_v58  ;;  %v2352_v57 = vld [vmem:[%s4584_s7 + $0x88] sm:$0xff] }
 0x211   :  { %v2955_v58 = vpack.c.bf16 %v2352_v57, %v2351_v56  ;;  %v2375_v56 = vld [vmem:[%s4584_s7 + $0x140] sm:$0xff]  ;;  %v2376_v57 = vld [vmem:[%s4584_s7 + $0x148] sm:$0xff] }
 0x213   :  { %2081 = vmatpush1.bf16.msra.mxu0 %v3373_v59  ;;  %2167 = vmatpush1.bf16.msra.mxu1 %v3376_v60  ;;  %v2335_v59 = vld [vmem:[%s4584_s7] sm:$0xff]  ;;  %v2336_v60 = vld [vmem:[%s4584_s7 + $0x8] sm:$0xff] }
 0x214   :  { %2082 = vmatprep.subr.bf16.mxu0 %v3381_v61  ;;  %2168 = vmatprep.subr.bf16.mxu1 %v3384_v62  ;;  %v2957_v61 = vpack.c.bf16 %v2336_v60, %v2335_v59  ;;  %v2384_v62 = vld [vmem:[%s4584_s7 + $0x188] sm:$0xff]  ;;  %v2361_v59 = vld [vmem:[%s4584_s7 + $0xd0] sm:$0xff]  ;;  %v2362_v60 = vld [vmem:[%s4584_s7 + $0xd8] sm:$0xff] }
 0x217   :  { %2083 = vmatpush1.bf16.msra.mxu0 %v3379_v63  ;;  %2169 = vmatpush1.bf16.msra.mxu1 %v3382_v0  ;;  %v2367_v0 = vld [vmem:[%s4584_s7 + $0x100] sm:$0xff] }
 0x218   :  { %2084 = vmatprep.subr.bf16.mxu0 %v3387_v1  ;;  %2170 = vmatprep.subr.bf16.mxu1 %v3390_v3  ;;  %v2368_v1 = vld [vmem:[%s4584_s7 + $0x108] sm:$0xff] }
 0x219   :  { %v2989_v3 = vpack.c.bf16 %v2368_v1, %v2367_v0  ;;  %v2394_v0 = vld [vmem:[%s4584_s7 + $0x1d8] sm:$0xff] }
 0x21b   :  { %2085 = vmatpush1.bf16.msra.mxu0 %v3385_v4  ;;  %2171 = vmatpush1.bf16.msra.mxu1 %v3388_v5  ;;  %v2353_v4 = vld [vmem:[%s4584_s7 + $0x90] sm:$0xff]  ;;  %v2354_v5 = vld [vmem:[%s4584_s7 + $0x98] sm:$0xff] }
 0x21c   :  { %2086 = vmatprep.subr.bf16.mxu0 %v3393_v6  ;;  %2172 = vmatprep.subr.bf16.mxu1 %v3396_v7  ;;  %v2959_v6 = vpack.c.bf16 %v2354_v5, %v2353_v4  ;;  %v2337_v7 = vld [vmem:[%s4584_s7 + $0x10] sm:$0xff]  ;;  %v2378_v5 = vld [vmem:[%s4584_s7 + $0x158] sm:$0xff] }
 0x21d   :  { %v2377_v4 = vld [vmem:[%s4584_s7 + $0x150] sm:$0xff] }
 0x21f   :  { %2087 = vmatpush1.bf16.msra.mxu0 %v3391_v8  ;;  %2173 = vmatpush1.bf16.msra.mxu1 %v3394_v9  ;;  %v2338_v8 = vld [vmem:[%s4584_s7 + $0x18] sm:$0xff] }
 0x220   :  { %2088 = vmatprep.subr.bf16.mxu0 %v3399_v10  ;;  %2174 = vmatprep.subr.bf16.mxu1 %v3402_v11  ;;  %v2961_v9 = vpack.c.bf16 %v2338_v8, %v2337_v7  ;;  %v2385_v10 = vld [vmem:[%s4584_s7 + $0x190] sm:$0xff]  ;;  %v2386_v11 = vld [vmem:[%s4584_s7 + $0x198] sm:$0xff]  ;;  %v3009_v7 = vpack.c.bf16 %v2378_v5, %v2377_v4  ;;  %v2364_v8 = vld [vmem:[%s4584_s7 + $0xe8] sm:$0xff] }
 0x223   :  { %2089 = vmatpush1.bf16.msra.mxu0 %v3397_v12  ;;  %2175 = vmatpush1.bf16.msra.mxu1 %v3400_v13  ;;  %v2991_v12 = vpack.c.bf16 %v2386_v11, %v2385_v10  ;;  %v2369_v13 = vld [vmem:[%s4584_s7 + $0x110] sm:$0xff]  ;;  %v2348_v10 = vld [vmem:[%s4584_s7 + $0x68] sm:$0xff] }
 0x224   :  { %2090 = vmatprep.subr.bf16.mxu0 %v3405_v2  ;;  %2176 = vmatprep.subr.bf16.mxu1 %v3408_v14  ;;  %v2370_v2 = vld [vmem:[%s4584_s7 + $0x118] sm:$0xff]  ;;  %v3463_v14 = vmov 0.0  }
 0x225   :  { %61 = vst [vmem:[#allocation2] sm:$0xff] %v3463_v14  ;;  %v2379_v14 = vld [vmem:[%s4584_s7 + $0x160] sm:$0xff] }
 0x227   :  { %2091 = vmatpush1.bf16.msra.mxu0 %v3403_v15  ;;  %2177 = vmatpush1.bf16.msra.mxu1 %v3406_v16  ;;  %v2993_v15 = vpack.c.bf16 %v2370_v2, %v2369_v13  ;;  %v2355_v16 = vld [vmem:[%s4584_s7 + $0xa0] sm:$0xff]  ;;  %v2396_v2 = vld [vmem:[%s4584_s7 + $0x1e8] sm:$0xff] }
 0x228   :  { %2092 = vmatprep.subr.bf16.mxu0 %v3411_v17  ;;  %2178 = vmatprep.subr.bf16.mxu1 %v3414_v18  ;;  %v2356_v17 = vld [vmem:[%s4584_s7 + $0xa8] sm:$0xff]  ;;  %v2395_v13 = vld [vmem:[%s4584_s7 + $0x1e0] sm:$0xff] }
 0x229   :  { %v2963_v18 = vpack.c.bf16 %v2356_v17, %v2355_v16  ;;  %v2380_v16 = vld [vmem:[%s4584_s7 + $0x168] sm:$0xff]  ;;  %v2365_v17 = vld [vmem:[%s4584_s7 + $0xf0] sm:$0xff] }
 0x22b   :  { %2093 = vmatpush1.bf16.msra.mxu0 %v3409_v19  ;;  %2179 = vmatpush1.bf16.msra.mxu1 %v3412_v20  ;;  %v2339_v19 = vld [vmem:[%s4584_s7 + $0x20] sm:$0xff]  ;;  %v2340_v20 = vld [vmem:[%s4584_s7 + $0x28] sm:$0xff] }
 0x22c   :  { %2094 = vmatprep.subr.bf16.mxu0 %v3417_v21  ;;  %2180 = vmatprep.subr.bf16.mxu1 %v3420_v22  ;;  %v2965_v21 = vpack.c.bf16 %v2340_v20, %v2339_v19  ;;  %v2387_v22 = vld [vmem:[%s4584_s7 + $0x1a0] sm:$0xff]  ;;  %v3013_v19 = vpack.c.bf16 %v2380_v16, %v2379_v14 }
 0x22f   :  { %2095 = vmatpush1.bf16.msra.mxu0 %v3415_v23  ;;  %2181 = vmatpush1.bf16.msra.mxu1 %v3418_v24  ;;  %v2388_v23 = vld [vmem:[%s4584_s7 + $0x1a8] sm:$0xff] }
 0x230   :  { %2096 = vmatprep.subr.bf16.mxu0 %v3423_v27  ;;  %2182 = vmatprep.subr.bf16.mxu1 %v3426_v30  ;;  %v2995_v24 = vpack.c.bf16 %v2388_v23, %v2387_v22  ;;  %v2371_v27 = vld [vmem:[%s4584_s7 + $0x120] sm:$0xff]  ;;  %v2372_v30 = vld [vmem:[%s4584_s7 + $0x128] sm:$0xff]  ;;  %v2350_v22 = vld [vmem:[%s4584_s7 + $0x78] sm:$0xff] }
 0x231   :  { %v2397_v23 = vld [vmem:[%s4584_s7 + $0x1f0] sm:$0xff] }
 0x233   :  { %2097 = vmatpush1.bf16.msra.mxu0 %v3421_v32  ;;  %2183 = vmatpush1.bf16.msra.mxu1 %v3424_v34  ;;  %v2997_v32 = vpack.c.bf16 %v2372_v30, %v2371_v27  ;;  %v2357_v34 = vld [vmem:[%s4584_s7 + $0xb0] sm:$0xff] }
 0x234   :  { %2098 = vmatprep.subr.bf16.mxu0 %v3429_v35  ;;  %2184 = vmatprep.subr.bf16.mxu1 %v3432_v36  ;;  %v2358_v35 = vld [vmem:[%s4584_s7 + $0xb8] sm:$0xff] }
 0x235   :  { %v2967_v36 = vpack.c.bf16 %v2358_v35, %v2357_v34  ;;  %v2382_v34 = vld [vmem:[%s4584_s7 + $0x178] sm:$0xff] }
 0x237   :  { %2099 = vmatpush1.bf16.msra.mxu0 %v3427_v37  ;;  %2185 = vmatpush1.bf16.msra.mxu1 %v3430_v38  ;;  %v2341_v37 = vld [vmem:[%s4584_s7 + $0x30] sm:$0xff]  ;;  %v2342_v38 = vld [vmem:[%s4584_s7 + $0x38] sm:$0xff] }
 0x238   :  { %2100 = vmatprep.subr.bf16.mxu0 %v3435_v39  ;;  %2186 = vmatprep.subr.bf16.mxu1 %v3438_v40  ;;  %v2969_v39 = vpack.c.bf16 %v2342_v38, %v2341_v37  ;;  %v2389_v40 = vld [vmem:[%s4584_s7 + $0x1b0] sm:$0xff]  ;;  %v1371_v38 = vld [vmem:[%s4585_s6] sm:$0xf] }
 0x23b   :  { %2101 = vmatpush1.bf16.msra.mxu0 %v3433_v41  ;;  %2187 = vmatpush1.bf16.msra.mxu1 %v3436_v42  ;;  %v2390_v41 = vld [vmem:[%s4584_s7 + $0x1b8] sm:$0xff] }
 0x23c   :  { %2102 = vmatprep.subr.bf16.mxu0 %v3441_v43  ;;  %2188 = vmatprep.subr.bf16.mxu1 %v3444_v44  ;;  %v2999_v42 = vpack.c.bf16 %v2390_v41, %v2389_v40  ;;  %v2373_v43 = vld [vmem:[%s4584_s7 + $0x130] sm:$0xff]  ;;  %v2374_v44 = vld [vmem:[%s4584_s7 + $0x138] sm:$0xff]  ;;  %v1384_v40 = vrot.slane %v1371_v38, %v3763_v31 }
 0x23f   :  { %2103 = vmatpush1.bf16.msra.mxu0 %v3439_v45  ;;  %2189 = vmatpush1.bf16.msra.mxu1 %v3442_v46  ;;  %v3001_v45 = vpack.c.bf16 %v2374_v44, %v2373_v43  ;;  %v2359_v46 = vld [vmem:[%s4584_s7 + $0xc0] sm:$0xff]  ;;  %v1388_v43 = vrot.slane %v1371_v38, %v3767_v33 }
 0x240   :  { %2104 = vmatprep.subr.bf16.mxu0 %v3447_v47  ;;  %2190 = vmatprep.subr.bf16.mxu1 %v3450_v49  ;;  %v2360_v47 = vld [vmem:[%s4584_s7 + $0xc8] sm:$0xff] }
 0x241   :  { %v2971_v49 = vpack.c.bf16 %v2360_v47, %v2359_v46 }
 0x243   :  { %2105 = vmatpush1.bf16.msra.mxu0 %v3445_v50  ;;  %2191 = vmatpush1.bf16.msra.mxu1 %v3448_v51  ;;  %v2343_v50 = vld [vmem:[%s4584_s7 + $0x40] sm:$0xff]  ;;  %v2344_v51 = vld [vmem:[%s4584_s7 + $0x48] sm:$0xff] }
 0x244   :  { %2106 = vmatprep.subr.bf16.mxu0 %v3453_v52  ;;  %2192 = vmatprep.subr.bf16.mxu1 %v3456_v53  ;;  %v2973_v52 = vpack.c.bf16 %v2344_v51, %v2343_v50  ;;  %v2391_v53 = vld [vmem:[%s4584_s7 + $0x1c0] sm:$0xff] }
 0x247   :  { %2107 = vmatpush1.bf16.msra.mxu0 %v3451_v54  ;;  %2193 = vmatpush1.bf16.msra.mxu1 %v3454_v55  ;;  %v2392_v54 = vld [vmem:[%s4584_s7 + $0x1c8] sm:$0xff] }
 0x248   :  { %2956 = vmatprep.subr.bf16.mxu0 %v2955_v58  ;;  %v3003_v55 = vpack.c.bf16 %v2392_v54, %v2391_v53  ;;  %v3005_v58 = vpack.c.bf16 %v2376_v57, %v2375_v56 }
 0x24a   :  { %2109 = vmatmul.mubr.bf16.vlgmr.msra.gmra.mrb[8].mxu0 %v4166_v48  ;;  %2195 = vmatmul.mubr.bf16.vlgmr.msra.gmra.mrb[8].mxu1 %v4166_v48  ;;  %v2383_v48 = vld [vmem:[%s4584_s7 + $0x180] sm:$0xff] }
 0x24b   :  { %v2987_v63 = vpack.c.bf16 %v2384_v62, %v2383_v48  ;;  %2958 = vmatpush3.bf16.msra.mxu0 %v2957_v61  ;;  %v2345_v61 = vld [vmem:[%s4584_s7 + $0x50] sm:$0xff]  ;;  %v2975_v48 = vpack.c.bf16 %v2362_v60, %v2361_v59  ;;  %v2346_v62 = vld [vmem:[%s4584_s7 + $0x58] sm:$0xff] }
 0x24c   :  { %2960 = vmatprep.subr.bf16.mxu0 %v2959_v6  ;;  %v2977_v1 = vpack.c.bf16 %v2346_v62, %v2345_v61  ;;  %v2363_v6 = vld [vmem:[%s4584_s7 + $0xe0] sm:$0xff] }
 0x24d   :  { %2988 = vmatprep.subr.bf16.mxu1 %v2987_v63  ;;  %v2393_v63 = vld [vmem:[%s4584_s7 + $0x1d0] sm:$0xff]  ;;  %v2979_v11 = vpack.c.bf16 %v2364_v8, %v2363_v6 }
 0x24e   :  { %2990 = vmatpush3.bf16.msra.mxu1 %v2989_v3  ;;  %v3007_v3 = vpack.c.bf16 %v2394_v0, %v2393_v63 }
 0x24f   :  { %2962 = vmatpush3.bf16.msra.mxu0 %v2961_v9  ;;  %2992 = vmatprep.subr.bf16.mxu1 %v2991_v12  ;;  %v2347_v9 = vld [vmem:[%s4584_s7 + $0x60] sm:$0xff] }
 0x250   :  { %2964 = vmatprep.subr.bf16.mxu0 %v2963_v18  ;;  %v2981_v12 = vpack.c.bf16 %v2348_v10, %v2347_v9  ;;  %v2366_v18 = vld [vmem:[%s4584_s7 + $0xf8] sm:$0xff] }
 0x251   :  { %v2983_v20 = vpack.c.bf16 %v2366_v18, %v2365_v17 }
 0x252   :  { %2994 = vmatpush3.bf16.msra.mxu1 %v2993_v15  ;;  %v3011_v15 = vpack.c.bf16 %v2396_v2, %v2395_v13 }
 0x253   :  { %2966 = vmatpush3.bf16.msra.mxu0 %v2965_v21  ;;  %2996 = vmatprep.subr.bf16.mxu1 %v2995_v24  ;;  %v2349_v21 = vld [vmem:[%s4584_s7 + $0x70] sm:$0xff]  ;;  %v2398_v24 = vld [vmem:[%s4584_s7 + $0x1f8] sm:$0xff] }
 0x254   :  { %2968 = vmatprep.subr.bf16.mxu0 %v2967_v36  ;;  %v2985_v27 = vpack.c.bf16 %v2350_v22, %v2349_v21  ;;  %v3015_v30 = vpack.c.bf16 %v2398_v24, %v2397_v23  ;;  %v3464_v36 = vmov 1966171168  }
 0x255   :  { %v2245_v37 = vunpack.c.l.s4 %v3464_v36 }
 0x256   :  { %2998 = vmatpush3.bf16.msra.mxu1 %v2997_v32  ;;  %v2381_v32 = vld [vmem:[%s4584_s7 + $0x170] sm:$0xff] }
 0x257   :  { %2970 = vmatpush3.bf16.msra.mxu0 %v2969_v39  ;;  %3000 = vmatprep.subr.bf16.mxu1 %v2999_v42  ;;  %v3017_v35 = vpack.c.bf16 %v2382_v34, %v2381_v32  ;;  %v1376_v39 = vrot.slane %v1371_v38, %v3756_v28  ;;  %v2246_v41 = vunpack.c.0.s8 %v2245_v37  ;;  %v1380_v42 = vrot.slane %v1371_v38, %v3759_v29 }
 0x258   :  { %2972 = vmatprep.subr.bf16.mxu0 %v2971_v49 }
 0x259   :  { %v4556_v51 = vsub.s32 %v2246_v41, %v3750_v26 }
 0x25a   :  { %3002 = vmatpush3.bf16.msra.mxu1 %v3001_v45 }
 0x25b   :  { %2974 = vmatpush3.bf16.msra.mxu0 %v2973_v52  ;;  %3004 = vmatprep.subr.bf16.mxu1 %v3003_v55 }
 0x25c   :  { %2976 = vmatprep.subr.bf16.mxu0 %v2975_v48 }
 0x25e   :  { %3006 = vmatpush3.bf16.msra.mxu1 %v3005_v58 }
 0x25f   :  { %2978 = vmatpush3.bf16.msra.mxu0 %v2977_v1  ;;  %3008 = vmatprep.subr.bf16.mxu1 %v3007_v3 }
 0x260   :  { %2980 = vmatprep.subr.bf16.mxu0 %v2979_v11 }
 0x262   :  { %3010 = vmatpush3.bf16.msra.mxu1 %v3009_v7 }
 0x263   :  { %3012 = vmatprep.subr.bf16.mxu1 %v3011_v15  ;;  %2982 = vmatpush3.bf16.msra.mxu0 %v2981_v12 }
 0x264   :  { %2984 = vmatprep.subr.bf16.mxu0 %v2983_v20 }
 0x266   :  { %3014 = vmatpush3.bf16.msra.mxu1 %v3013_v19 }
 0x267   :  { %3016 = vmatprep.subr.bf16.mxu1 %v3015_v30  ;;  %2986 = vmatpush3.bf16.msra.mxu0 %v2985_v27 }
 0x26a   :  { %3018 = vmatpush3.bf16.msra.mxu1 %v3017_v35 }
 0x31d   :  { %v2110_v44 = vpop.f32.mrb[8].mxu0  ;;  %v2196_v45 = vpop.f32.mrb[8].mxu1 }
 0x31e   :  { %v3027_v46 = vadd.f32 %v2110_v44, %v1376_v39  ;;  %v3031_v47 = vadd.f32 %v2196_v45, %v1384_v40  ;;  %v2112_v49 = vpop.f32.mrb[9].mxu0  ;;  %v2198_v50 = vpop.f32.mrb[9].mxu1 }
 0x31f   :  { %v3028_v52 = vadd.f32 %v2112_v49, %v1380_v42  ;;  %v3032_v53 = vadd.f32 %v2198_v50, %v1388_v43  ;;  %v2114_v54 = vpop.f32.mrb[10].mxu0  ;;  %v2200_v28 = vpop.f32.mrb[10].mxu1 }
 0x320   :  { %v2205_v55 = vmax.f32 %v3027_v46, 0.0  ;;  %v2207_v31 = vmax.f32 %v3031_v47, 0.0  ;;  %v3029_v56 = vadd.f32 %v2114_v54, %v1376_v39  ;;  %v3033_v57 = vadd.f32 %v2200_v28, %v1384_v40  ;;  %v2116_v29 = vpop.f32.mrb[11].mxu0  ;;  %v2202_v58 = vpop.f32.mrb[11].mxu1 }
 0x321   :  { %v2206_v33 = vmax.f32 %v3028_v52, 0.0  ;;  %v2208_v59 = vmax.f32 %v3032_v53, 0.0  ;;  %v3030_v60 = vadd.f32 %v2116_v29, %v1380_v42  ;;  %v3034_v61 = vadd.f32 %v2202_v58, %v1388_v43 }
 0x322   :  { %v2214_v48 = vrot.slane %v2205_v55, 4  ;;  %v2226_v62 = vrot.slane %v2207_v31, 4  ;;  %v2209_v63 = vmax.f32 %v3029_v56, 0.0  ;;  %v2211_v0 = vmax.f32 %v3033_v57, 0.0 }
 0x323   :  { %v2220_v1 = vrot.slane %v2206_v33, 4  ;;  %v2232_v3 = vrot.slane %v2208_v59, 4  ;;  %v2210_v4 = vmax.f32 %v3030_v60, 0.0  ;;  %v2212_v5 = vmax.f32 %v3034_v61, 0.0 }
 0x324   :  { %v2215_v6 = vadd.f32 %v2214_v48, %v2205_v55  ;;  %v2227_v7 = vadd.f32 %v2226_v62, %v2207_v31  ;;  %v2275_v8 = vrot.slane %v2209_v63, 4  ;;  %v2287_v9 = vrot.slane %v2211_v0, 4  ;;  %v2213_v48 = vld [vmem:[#allocation2] ss:$2 sm:$0xf] }
 0x325   :  { %v2221_v10 = vadd.f32 %v2220_v1, %v2206_v33  ;;  %v2233_v11 = vadd.f32 %v2232_v3, %v2208_v59  ;;  %v2281_v12 = vrot.slane %v2210_v4, 4  ;;  %v2293_v13 = vrot.slane %v2212_v5, 4 }
 0x326   :  { %v2216_v2 = vrot.slane %v2215_v6, 2  ;;  %v2228_v14 = vrot.slane %v2227_v7, 2  ;;  %v2276_v15 = vadd.f32 %v2275_v8, %v2209_v63  ;;  %v2288_v16 = vadd.f32 %v2287_v9, %v2211_v0  ;;  %v2274_v0 = vld [vmem:[#allocation2 + $0x1] ss:$2 sm:$0xf] }
 0x327   :  { %v2222_v17 = vrot.slane %v2221_v10, 2  ;;  %v2234_v18 = vrot.slane %v2233_v11, 2  ;;  %v2282_v19 = vadd.f32 %v2281_v12, %v2210_v4  ;;  %v2294_v20 = vadd.f32 %v2293_v13, %v2212_v5 }
 0x328   :  { %v2217_v21 = vadd.f32 %v2216_v2, %v2215_v6  ;;  %v2229_v22 = vadd.f32 %v2228_v14, %v2227_v7  ;;  %v2277_v23 = vrot.slane %v2276_v15, 2  ;;  %v2289_v24 = vrot.slane %v2288_v16, 2 }
 0x329   :  { %v2223_v27 = vadd.f32 %v2222_v17, %v2221_v10  ;;  %v2235_v30 = vadd.f32 %v2234_v18, %v2233_v11  ;;  %v2283_v32 = vrot.slane %v2282_v19, 2  ;;  %v2295_v34 = vrot.slane %v2294_v20, 2 }
 0x32a   :  { %v2218_v35 = vrot.slane %v2217_v21, 1  ;;  %v2230_v36 = vrot.slane %v2229_v22, 1  ;;  %v2278_v37 = vadd.f32 %v2277_v23, %v2276_v15  ;;  %v2290_v38 = vadd.f32 %v2289_v24, %v2288_v16 }
 0x32b   :  { %v2224_v39 = vrot.slane %v2223_v27, 1  ;;  %v2236_v40 = vrot.slane %v2235_v30, 1  ;;  %v2284_v41 = vadd.f32 %v2283_v32, %v2282_v19  ;;  %v2296_v42 = vadd.f32 %v2295_v34, %v2294_v20 }
 0x32c   :  { %v2219_v43 = vadd.f32 %v2218_v35, %v2217_v21  ;;  %v2231_v44 = vadd.f32 %v2230_v36, %v2229_v22  ;;  %v2279_v45 = vrot.slane %v2278_v37, 1  ;;  %v2291_v46 = vrot.slane %v2290_v38, 1 }
 0x32d   :  { %v2225_v47 = vadd.f32 %v2224_v39, %v2223_v27  ;;  %v2237_v49 = vadd.f32 %v2236_v40, %v2235_v30  ;;  %v2285_v50 = vrot.slane %v2284_v41, 1  ;;  %v2297_v52 = vrot.slane %v2296_v42, 1 }
 0x32e   :  { %v2280_v53 = vadd.f32 %v2279_v45, %v2278_v37  ;;  %v2292_v54 = vadd.f32 %v2291_v46, %v2290_v38  ;;  %v3465_v5 = vmov 1983009808   ;;  %v14_v14 = vstv %s4586_s8 }
 0x32f   :  { %v2242_v28 = vcombine.low %v2219_v43, %v2225_v47  ;;  %v2243_v55 = vcombine.low %v2231_v44, %v2237_v49  ;;  %v2286_v31 = vadd.f32 %v2285_v50, %v2284_v41  ;;  %v2298_v56 = vadd.f32 %v2297_v52, %v2296_v42  ;;  %15 = vst [vmem:[#allocation3] sm:$0x1] %v14_v14 }
 0x330   :  { %v2409_v6 = vunpack.c.l.s4 %v3465_v5 }
 0x331   :  { %v2250_v57 = vrot.slane %v2242_v28, %v4556_v51  ;;  %v2257_v29 = vrot.slane %v2243_v55, %v4556_v51  ;;  %v2303_v58 = vcombine.low %v2280_v53, %v2286_v31  ;;  %v2304_v33 = vcombine.low %v2292_v54, %v2298_v56 }
 0x332   :  { %v2410_v7 = vunpack.c.0.s8 %v2409_v6 }
 0x333   :  { %v2258_v59 = vcombine.low %v2250_v57, %v2257_v29  ;;  %v2311_v60 = vrot.slane %v2303_v58, %v4556_v51  ;;  %v2318_v61 = vrot.slane %v2304_v33, %v4556_v51 }
 0x334   :  { %v2413_v8 = vsub.s32 %v2410_v7, %v3750_v26 }
 0x335   :  { %v2265_v62 = vrot.slane %v2258_v59, %v4556_v51  ;;  %v2319_v63 = vcombine.low %v2311_v60, %v2318_v61 }
 0x336   :  { %v2883_v16 = vld [vmem:[#allocation3] ss:$0 sm:$0xff] }
 0x337   :  { %v2267_v1 = vadd.f32 %v2265_v62, %v2213_v48  ;;  %v2326_v3 = vrot.slane %v2319_v63, %v4556_v51 }
 0x339   :  { %2272 = vst.msk [vmem:[#allocation2] ss:$2 sm:$0xf] %vm2270_vm3, %v2267_v1  ;;  %v2328_v4 = vadd.f32 %v2326_v3, %v2274_v0 }
 0x33b   :  { %2329 = vst.msk [vmem:[#allocation2 + $0x1] ss:$2 sm:$0xf] %vm2270_vm3, %v2328_v4 }
 0x342   :  { %v2333_v9 = vld [vmem:[#allocation2] sm:$0xff] }
 0x343   :  { %v2334_v10 = vmul.f32 0.125, %v2333_v9 }
 0x345   :  { %v2414_v11 = vrot.slane %v2334_v10, %v2413_v8  ;;  %v2407_v12 = vcombine.high %v2334_v10, %v2334_v10 }
 0x347   :  { %v2422_v13 = vcombine.high %v2414_v11, %v2414_v11  ;;  %v2421_v2 = vrot.slane %v2407_v12, %v2413_v8 }
 0x349   :  { %2492 = vmatprep.mubr.f32.mxu0 %v2422_v13  ;;  %v2423_v25 = vcombine.high %v2421_v2, %v2421_v2 }
 0x34a   :  { %2493 = vmatmul.mubr.f32.vlgmr.msra.gmra.mrb[12].mxu0 %v2414_v11 }
 0x34b   :  { %2562 = vmatprep.mubr.f32.mxu1 %v2423_v25 }
 0x34c   :  { %2563 = vmatmul.mubr.f32.vlgmr.msra.gmra.mrb[12].mxu1 %v2421_v2 }
 0x41d   :  { %v2917_v15 = vpop.f32.mrb[12].mxu0 }
 0x41e   :  { %v2918_v17 = vpop.f32.mrb[13].mxu0 }
 0x41f   :  { %v2919_v26 = vadd.f32 %v2918_v17, %v2917_v15  ;;  %v2952_v18 = vpop.f32.mrb[12].mxu1 }
 0x420   :  { %v2953_v19 = vpop.f32.mrb[13].mxu1 }
 0x421   :  { %v2495_v20 = vadd.f32 %v2919_v26, %v2883_v16  ;;  %v2954_v21 = vadd.f32 %v2953_v19, %v2952_v18 }
 0x423   :  { %v2565_v22 = vadd.f32 %v2954_v21, %v2495_v20 }
 0x425   :  { %v2884_v23 = vmul.f32 -1.442695, %v2565_v22 }
 0x427   :  { %3457 = vpow2.f32 %v2884_v23 }
 0x431   :  { %v3458_v24 = vpop.eup %3457 }
 0x432   :  { %v2571_v27 = vadd.f32 1.0, %v3458_v24 }
 0x434   :  { %3459 = vrcp.f32 %v2571_v27 }
 0x43e   :  { %v3460_v30 = vpop.eup %3459 }
 0x43f   :  { %v2581_v32 = vrot.slane %v3460_v30, %v4556_v51 }
 0x441   :  { %v2582_v34 = vcombine.high %v2581_v32, %v2581_v32  ;;  %v2589_v35 = vrot.slane %v2581_v32, %v4556_v51 }
 0x443   :  { %v2596_v36 = vrot.slane %v2582_v34, %v4556_v51  ;;  %2600 = vst.msk [vmem:[%s4587_s9] sm:$0x1] %vm2599_vm4, %v2589_v35 }
 0x445   :  { %2601 = vst.msk [vmem:[%s4587_s9 + $0x1] sm:$0x1] %vm2599_vm4, %v2596_v36 }

</bundles_post_ra>
